<compile_context>
chip_gen: v7x
topology: tpu7x:2x2x1
jax: 0.10.0
libtpu: 0.0.40
codegen_flags: <defaults>
</compile_context>

<pallas_src>
import functools
import math

import numpy as np
import jax
import jax.numpy as jnp
from jax import lax
from jax.experimental import pallas as pl
from jax.experimental.pallas import tpu as pltpu


# ------------------------- host-side operator construction -------------------------

def _bilinear_matrix(n_in, n_out):
    """(n_out, n_in) interpolation matrix for bilinear, align_corners=True (numpy)."""
    U = np.zeros((n_out, n_in), np.float64)
    if n_in == 1 or n_out == 1:              # degenerate sizes: everything maps to idx 0
        U[:, 0] = 1.0
        return U.astype(np.float32)
    idx = np.arange(n_out, dtype=np.float64) * (n_in - 1) / (n_out - 1)
    lo = np.clip(np.floor(idx).astype(np.int64), 0, n_in - 2)
    frac = idx - lo
    rows = np.arange(n_out)
    U[rows, lo] += 1.0 - frac
    U[rows, lo + 1] += frac
    return U.astype(np.float32)


def _conv3x3_band_matrices(w_oihw, W):
    """Fold a 3x3 / pad-1 / stride-1 conv into 3 banded matrices (one per kernel row).

    Returns M of shape (3, W*Cin, W*Cout) such that for activation rows a (H, W*Cin)
    (channel-fastest lanes) the conv output row r equals sum_dy a[r+dy-1] @ M[dy]
    (out-of-range rows are zero).  Zero padding along W is folded into M.
    """
    w = np.asarray(w_oihw, dtype=np.float32)            # (Cout, Cin, 3, 3) OIHW
    Cout, Cin = w.shape[0], w.shape[1]
    M = np.zeros((3, W * Cin, W * Cout), np.float32)
    for dy in range(3):
        for kw in range(3):
            blk = w[:, :, dy, kw].T                      # (Cin, Cout)
            for wo in range(W):
                wi = wo + kw - 1
                if 0 <= wi < W:                          # W padding folded in
                    M[dy, wi * Cin:(wi + 1) * Cin, wo * Cout:(wo + 1) * Cout] = blk
    return M


# --------------------------------- Pallas kernel ------------------------------------

def _upsample_block_kernel(x_ref, s1_ref, b1_ref, m1r_ref, uhb_ref,
                           s2_ref, b2_ref, m2_ref, wscr_ref, o_ref, sh_ref,
                           *, Ho, mm_dtype, sc_identity, sc_rowup):
    f32 = jnp.float32
    L, lanes_out = o_ref.shape                 # L = Nb * Ho rows (Nb images per step)

    xf = x_ref[...]                                                  # (Nb*H, W*Cin) f32

    # BN1 (eval, folded) + ReLU in f32, then cast for the MXU.
    a1 = jnp.maximum(xf * s1_ref[...] + b1_ref[...], 0.0).astype(mm_dtype)

    # conv1 as 3 banded matmuls; the width upsample kron(Uw^T, I_C) is pre-folded into
    # the bands, so the lane expansion happens on the cheap (H-row) side.
    yb0 = jnp.dot(a1, m1r_ref[0], preferred_element_type=f32)        # (Nb*H, Wo*Cout)
    yb1 = jnp.dot(a1, m1r_ref[1], preferred_element_type=f32)
    yb2 = jnp.dot(a1, m1r_ref[2], preferred_element_type=f32)

    # Row (H -> Ho) bilinear upsample.  conv1's zero-row padding shift of each band is
    # pre-folded into three shifted copies of Uh (block-diag over the Nb images), so no
    # pad scratch / roll / mask is needed on this path.
    up = jnp.dot(uhb_ref[0], yb0.astype(mm_dtype), preferred_element_type=f32)
    up = up + jnp.dot(uhb_ref[1], yb1.astype(mm_dtype), preferred_element_type=f32)
    up = up + jnp.dot(uhb_ref[2], yb2.astype(mm_dtype), preferred_element_type=f32)

    # BN2 (eval, folded) + ReLU (f32).  Dropout2d(p=0.0) is an identity.
    a2 = jnp.maximum(up * s2_ref[...] + b2_ref[...], 0.0).astype(mm_dtype)

    # conv2: three banded matmuls on the upsampled grid.  The +-1 row shift between
    # bands uses a small shift buffer; only boundary rows are zeroed and an iota mask
    # kills cross-image leakage (per feedback: no full-scratch zero fill).
    rid = lax.broadcasted_iota(jnp.int32, (L, lanes_out), 0)

    y = jnp.dot(a2, m2_ref[1], preferred_element_type=f32)           # center band

    # band dy=0 contributes z0[g-1] to row g (zero at each image's first row).
    sh_ref[0:1, :] = jnp.zeros((1, lanes_out), f32)
    sh_ref[1:L + 1, :] = jnp.dot(a2, m2_ref[0], preferred_element_type=f32)
    y = y + jnp.where(rid % Ho == 0, 0.0, sh_ref[0:L, :])

    # band dy=2 contributes z2[g+1] to row g (zero at each image's last row).
    sh_ref[0:L, :] = jnp.dot(a2, m2_ref[2], preferred_element_type=f32)
    sh_ref[L:L + 1, :] = jnp.zeros((1, lanes_out), f32)
    y = y + jnp.where(rid % Ho == Ho - 1, 0.0, sh_ref[1:L + 1, :])

    # Shortcut (trace-time specialized): identity | 1x1 conv (+ width up) | + row up.
    if sc_identity:                       # in_channels == out_channels and stride == 1
        sc = xf
    else:
        sc = jnp.dot(xf.astype(mm_dtype), wscr_ref[...], preferred_element_type=f32)
        if sc_rowup:                      # stride != 1
            sc = jnp.dot(uhb_ref[1], sc.astype(mm_dtype), preferred_element_type=f32)

    o_ref[...] = (y + sc).astype(o_ref.dtype)


# ---------------------------------- block builder -----------------------------------

def build_upsample_block(params, *, stride, in_channels, out_channels, H, W, batch,
                         matmul_dtype=jnp.bfloat16):
    """Builds all constant operators ONCE on the host (numpy, concrete weights) and
    returns a forward(x_nchw) callable.  Keep the build outside jit (operators must be
    concrete); the returned forward is jit-safe."""
    eps = 1e-5
    Cin, Cout = in_channels, out_channels
    N = batch
    Ho, Wo = H * stride, W * stride
    lanes_in, lanes_out = W * Cin, Wo * Cout

    Nb = math.gcd(N, 8)                       # images per grid step (row batching)
    steps = N // Nb

    # ---- BatchNorm (eval) folded into per-channel scale/shift, tiled across lanes.
    def _bn_fold(pfx, C, reps):
        g = np.asarray(params[pfx + "_gamma"], np.float32)
        b = np.asarray(params[pfx + "_beta"], np.float32)
        mu = np.asarray(params[pfx + "_mean"], np.float32)
        v = np.asarray(params[pfx + "_var"], np.float32)
        s = g / np.sqrt(v + eps)
        sh = b - mu * s
        return (jnp.asarray(np.tile(s, reps).reshape(1, reps * C)),
                jnp.asarray(np.tile(sh, reps).reshape(1, reps * C)))

    s1t, b1t = _bn_fold("bn1", Cin, W)
    s2t, b2t = _bn_fold("bn2", Cout, Wo)

    # ---- Bilinear upsample operators (align_corners=True).
    Uh = _bilinear_matrix(H, Ho)                                       # (Ho, H)
    Uw = _bilinear_matrix(W, Wo)                                       # (Wo, W)
    r = np.kron(Uw.T, np.eye(Cout, dtype=np.float32))                  # (W*Cout, Wo*Cout)

    # ---- conv1 bands with the width upsample folded in; conv2 bands as-is.
    m1 = _conv3x3_band_matrices(params["conv1_w"], W)                  # (3, W*Cin, W*Cout)
    m1r = np.einsum("dij,jk->dik", m1, r)                              # (3, W*Cin, Wo*Cout)
    m2 = _conv3x3_band_matrices(params["conv2_w"], Wo)                 # (3, Wo*Cout, Wo*Cout)

    # ---- Shifted row-upsample operators: UhS[dy][o, h] = Uh[o, h - dy + 1] (0 if OOB),
    #      folding conv1's zero-row padding into the H -> Ho interpolation.
    UhS = np.zeros((3, Ho, H), np.float32)
    UhS[0, :, :H - 1] = Uh[:, 1:]
    UhS[1] = Uh
    UhS[2, :, 1:] = Uh[:, :H - 1]
    eyeNb = np.eye(Nb, dtype=np.float32)
    uhb = np.stack([np.kron(eyeNb, UhS[d]) for d in range(3)])         # (3, Nb*Ho, Nb*H)

    # ---- Shortcut operator folded with the width upsample (used unless identity case).
    if Cin == Cout:
        wsc = np.eye(W * Cin, dtype=np.float32)
    else:
        wsc_m = np.asarray(params["shortcut_w"], np.float32)[:, :, 0, 0].T   # (Cin, Cout)
        wsc = np.kron(np.eye(W, dtype=np.float32), wsc_m)                    # (W*Cin, W*Cout)
    wscr = wsc @ r                                                           # (W*Cin, Wo*Cout)

    # Matmul operands in bf16 (or f32 for the reference-precision path).
    m1r_d = jnp.asarray(m1r, matmul_dtype)
    m2_d = jnp.asarray(m2, matmul_dtype)
    uhb_d = jnp.asarray(uhb, matmul_dtype)
    wscr_d = jnp.asarray(wscr, matmul_dtype)

    sc_identity = (Cin == Cout and stride == 1)
    sc_rowup = (stride != 1)

    kernel = functools.partial(_upsample_block_kernel,
                               Ho=Ho, mm_dtype=matmul_dtype,
                               sc_identity=sc_identity, sc_rowup=sc_rowup)

    call = pl.pallas_call(
        kernel,
        out_shape=jax.ShapeDtypeStruct((N * Ho, lanes_out), jnp.float32),
        grid=(steps,),
        in_specs=[
            pl.BlockSpec((Nb * H, lanes_in), lambda n: (n, 0)),              # x (row-batched)
            pl.BlockSpec((1, lanes_in), lambda n: (0, 0)),                   # bn1 scale
            pl.BlockSpec((1, lanes_in), lambda n: (0, 0)),                   # bn1 shift
            pl.BlockSpec((3, lanes_in, lanes_out), lambda n: (0, 0, 0)),     # conv1 (x) Uw bands
            pl.BlockSpec((3, Nb * Ho, Nb * H), lambda n: (0, 0, 0)),         # shifted Uh (blockdiag)
            pl.BlockSpec((1, lanes_out), lambda n: (0, 0)),                  # bn2 scale
            pl.BlockSpec((1, lanes_out), lambda n: (0, 0)),                  # bn2 shift
            pl.BlockSpec((3, lanes_out, lanes_out), lambda n: (0, 0, 0)),    # conv2 bands
            pl.BlockSpec((lanes_in, lanes_out), lambda n: (0, 0)),           # shortcut (x) Uw
        ],
        out_specs=pl.BlockSpec((Nb * Ho, lanes_out), lambda n: (n, 0)),
        scratch_shapes=[pltpu.VMEM((Nb * Ho + 1, lanes_out), jnp.float32)],  # band shift buf
        compiler_params=pltpu.CompilerParams(
            dimension_semantics=("parallel",),
            vmem_limit_bytes=32 * 1024 * 1024),     # explicit; tiny footprint here
    )

    def forward(x_nchw):
        assert x_nchw.shape == (N, Cin, H, W), x_nchw.shape
        # NCHW -> NHWC -> (N*H, W*Cin): lane-dense, channel-fastest packing.
        x2 = jnp.transpose(x_nchw, (0, 2, 3, 1)).astype(jnp.float32)
        x2 = x2.reshape(N * H, lanes_in)
        out2 = call(x2, s1t, b1t, m1r_d, uhb_d, s2t, b2t, m2_d, wscr_d)
        out = out2.reshape(N, Ho, Wo, Cout)
        return jnp.transpose(out, (0, 3, 1, 2))      # back to NCHW

    return forward


# ------------------------ pure-JAX reference (for sanity) ------------------------

def reference_forward(x_nchw, params, stride, in_channels, out_channels):
    eps = 1e-5
    x = jnp.transpose(x_nchw, (0, 2, 3, 1)).astype(jnp.float32)

    def bn_relu(v, pfx):
        s = params[pfx + "_gamma"] / jnp.sqrt(params[pfx + "_var"] + eps)
        return jnp.maximum(v * s + (params[pfx + "_beta"] - params[pfx + "_mean"] * s), 0.0)

    def conv(v, w):
        wn = jnp.transpose(w, (2, 3, 1, 0))  # OIHW -> HWIO
        return lax.conv_general_dilated(v, wn, (1, 1), "SAME",
                                        dimension_numbers=("NHWC", "HWIO", "NHWC"))

    H, W = x.shape[1], x.shape[2]
    Uh = jnp.asarray(_bilinear_matrix(H, H * stride))
    Uw = jnp.asarray(_bilinear_matrix(W, W * stride))

    def up(v):
        t = jnp.einsum("oh,nhwc->nowc", Uh, v)
        return jnp.einsum("pw,nowc->nopc", Uw, t)

    y = bn_relu(x, "bn1")
    y = conv(y, params["conv1_w"])
    y = up(y)
    y = bn_relu(y, "bn2")
    y = conv(y, params["conv2_w"])
    if in_channels == out_channels and stride == 1:
        sc = x
    elif in_channels == out_channels and stride == 2:
        sc = up(x)
    else:
        sc = up(conv(x, params["shortcut_w"]))
    return jnp.transpose(y + sc, (0, 3, 1, 2))


# ------------------------------------ main ----------------------------------------

if __name__ == "__main__":
    in_channels, out_channels, stride = 4, 8, 2
    N, H, W = 2, 16, 16

    key = jax.random.PRNGKey(0)
    ks = jax.random.split(key, 12)

    def nrm(k, shape, scale=0.1):
        return scale * jax.random.normal(k, shape, jnp.float32)

    params = {
        "bn1_gamma": 1.0 + nrm(ks[0], (in_channels,)),
        "bn1_beta": nrm(ks[1], (in_channels,)),
        "bn1_mean": nrm(ks[2], (in_channels,)),
        "bn1_var": jnp.abs(jax.random.normal(ks[3], (in_channels,), jnp.float32)) + 0.5,
        "conv1_w": nrm(ks[4], (out_channels, in_channels, 3, 3)),
        "bn2_gamma": 1.0 + nrm(ks[5], (out_channels,)),
        "bn2_beta": nrm(ks[6], (out_channels,)),
        "bn2_mean": nrm(ks[7], (out_channels,)),
        "bn2_var": jnp.abs(jax.random.normal(ks[8], (out_channels,), jnp.float32)) + 0.5,
        "conv2_w": nrm(ks[9], (out_channels, out_channels, 3, 3)),
        "shortcut_w": nrm(ks[10], (out_channels, in_channels, 1, 1)),
    }

    x = jax.random.normal(ks[11], (N, in_channels, H, W), jnp.float32)

    ref = reference_forward(x, params, stride, in_channels, out_channels)

    # f32-matmul path: tight structural/numerical check of the fused kernel.
    fwd_f32 = build_upsample_block(params, stride=stride, in_channels=in_channels,
                                   out_channels=out_channels, H=H, W=W, batch=N,
                                   matmul_dtype=jnp.float32)
    out_f32 = jax.block_until_ready(fwd_f32(x))
    assert out_f32.shape == (N, out_channels, H * stride, W * stride), out_f32.shape
    err32 = float(jnp.max(jnp.abs(out_f32 - ref)))
    assert err32 < 5e-3, f"f32 path max abs err {err32}"

    # bf16-matmul path (production config per perf review): 4-matmul bf16 chain, so the
    # absolute tolerance is relaxed; the mean-error bound still catches structural bugs.
    fwd_bf16 = build_upsample_block(params, stride=stride, in_channels=in_channels,
                                    out_channels=out_channels, H=H, W=W, batch=N,
                                    matmul_dtype=jnp.bfloat16)
    out_bf16 = jax.block_until_ready(fwd_bf16(x))
    assert out_bf16.shape == (N, out_channels, H * stride, W * stride), out_bf16.shape
    err16 = float(jnp.max(jnp.abs(out_bf16 - ref)))
    mean16 = float(jnp.mean(jnp.abs(out_bf16 - ref)))
    assert err16 < 4e-2 and mean16 < 4e-3, f"bf16 path max {err16}, mean {mean16}"

    print("KERNEL_OK")
</pallas_src>

<mosaic_0001>
module attributes {stable_mosaic.version = 11 : i64} {
  func.func @_upsample_block_kernel(%arg0: i32, %arg1: memref<32x64xf32, #tpu.memory_space<vmem>>, %arg2: memref<1x64xf32, #tpu.memory_space<vmem>>, %arg3: memref<1x64xf32, #tpu.memory_space<vmem>>, %arg4: memref<3x64x256xf32, #tpu.memory_space<vmem>>, %arg5: memref<3x64x32xf32, #tpu.memory_space<vmem>>, %arg6: memref<1x256xf32, #tpu.memory_space<vmem>>, %arg7: memref<1x256xf32, #tpu.memory_space<vmem>>, %arg8: memref<3x256x256xf32, #tpu.memory_space<vmem>>, %arg9: memref<64x256xf32, #tpu.memory_space<vmem>>, %arg10: memref<64x256xf32, #tpu.memory_space<vmem>>, %arg11: memref<65x256xf32, #tpu.memory_space<vmem>>) attributes {dimension_semantics = [#tpu.dimension_semantics<parallel>], iteration_bounds = array<i64: 1>, scalar_prefetch = 0 : i64, scratch_operands = 1 : i64, tpu.core_type = #tpu.core_type<tc>, window_params = [{transform_indices = @transform_0, window_bounds = array<i64: 32, 64>}, {pipeline_mode = #tpu.pipeline_mode<synchronous>, transform_indices = @transform_1, window_bounds = array<i64: 1, 64>}, {pipeline_mode = #tpu.pipeline_mode<synchronous>, transform_indices = @transform_2, window_bounds = array<i64: 1, 64>}, {pipeline_mode = #tpu.pipeline_mode<synchronous>, transform_indices = @transform_3, window_bounds = array<i64: 3, 64, 256>}, {pipeline_mode = #tpu.pipeline_mode<synchronous>, transform_indices = @transform_4, window_bounds = array<i64: 3, 64, 32>}, {pipeline_mode = #tpu.pipeline_mode<synchronous>, transform_indices = @transform_5, window_bounds = array<i64: 1, 256>}, {pipeline_mode = #tpu.pipeline_mode<synchronous>, transform_indices = @transform_6, window_bounds = array<i64: 1, 256>}, {pipeline_mode = #tpu.pipeline_mode<synchronous>, transform_indices = @transform_7, window_bounds = array<i64: 3, 256, 256>}, {pipeline_mode = #tpu.pipeline_mode<synchronous>, transform_indices = @transform_8, window_bounds = array<i64: 64, 256>}, {transform_indices = @transform_9, window_bounds = array<i64: 64, 256>}]} {
    %c0 = arith.constant 0 : index
    %c0_0 = arith.constant 0 : index
    %0 = vector.load %arg1[%c0, %c0_0] : memref<32x64xf32, #tpu.memory_space<vmem>>, vector<32x64xf32>
    %c0_1 = arith.constant 0 : index
    %c0_2 = arith.constant 0 : index
    %1 = vector.load %arg2[%c0_1, %c0_2] : memref<1x64xf32, #tpu.memory_space<vmem>>, vector<1x64xf32>
    %2 = vector.broadcast %1 : vector<1x64xf32> to vector<32x64xf32>
    %3 = arith.mulf %0, %2 : vector<32x64xf32>
    %c0_3 = arith.constant 0 : index
    %c0_4 = arith.constant 0 : index
    %4 = vector.load %arg3[%c0_3, %c0_4] : memref<1x64xf32, #tpu.memory_space<vmem>>, vector<1x64xf32>
    %5 = vector.broadcast %4 : vector<1x64xf32> to vector<32x64xf32>
    %6 = arith.addf %3, %5 : vector<32x64xf32>
    %cst = arith.constant 0.000000e+00 : f32
    %7 = vector.broadcast %cst : f32 to vector<32x64xf32>
    %8 = arith.maximumf %6, %7 : vector<32x64xf32>
    %c0_5 = arith.constant 0 : index
    %c0_6 = arith.constant 0 : index
    %c0_7 = arith.constant 0 : index
    %9 = vector.load %arg4[%c0_5, %c0_6, %c0_7] : memref<3x64x256xf32, #tpu.memory_space<vmem>>, vector<1x64x256xf32>
    %10 = vector.shape_cast %9 : vector<1x64x256xf32> to vector<64x256xf32>
    %cst_8 = arith.constant dense<0.000000e+00> : vector<32x256xf32>
    %11 = tpu.matmul %8, %10, %cst_8 {dimension_numbers = #tpu.dot_dimension_numbers<[1], [0], [0], [1], [0, 0, 1, 1], [], []>} : vector<32x64xf32>, vector<64x256xf32>, vector<32x256xf32> -> vector<32x256xf32>
    %c1 = arith.constant 1 : index
    %c0_9 = arith.constant 0 : index
    %c0_10 = arith.constant 0 : index
    %12 = vector.load %arg4[%c1, %c0_9, %c0_10] : memref<3x64x256xf32, #tpu.memory_space<vmem>>, vector<1x64x256xf32>
    %13 = vector.shape_cast %12 : vector<1x64x256xf32> to vector<64x256xf32>
    %cst_11 = arith.constant dense<0.000000e+00> : vector<32x256xf32>
    %14 = tpu.matmul %8, %13, %cst_11 {dimension_numbers = #tpu.dot_dimension_numbers<[1], [0], [0], [1], [0, 0, 1, 1], [], []>} : vector<32x64xf32>, vector<64x256xf32>, vector<32x256xf32> -> vector<32x256xf32>
    %c2 = arith.constant 2 : index
    %c0_12 = arith.constant 0 : index
    %c0_13 = arith.constant 0 : index
    %15 = vector.load %arg4[%c2, %c0_12, %c0_13] : memref<3x64x256xf32, #tpu.memory_space<vmem>>, vector<1x64x256xf32>
    %16 = vector.shape_cast %15 : vector<1x64x256xf32> to vector<64x256xf32>
    %cst_14 = arith.constant dense<0.000000e+00> : vector<32x256xf32>
    %17 = tpu.matmul %8, %16, %cst_14 {dimension_numbers = #tpu.dot_dimension_numbers<[1], [0], [0], [1], [0, 0, 1, 1], [], []>} : vector<32x64xf32>, vector<64x256xf32>, vector<32x256xf32> -> vector<32x256xf32>
    %c0_15 = arith.constant 0 : index
    %c0_16 = arith.constant 0 : index
    %c0_17 = arith.constant 0 : index
    %18 = vector.load %arg5[%c0_15, %c0_16, %c0_17] : memref<3x64x32xf32, #tpu.memory_space<vmem>>, vector<1x64x32xf32>
    %19 = vector.shape_cast %18 : vector<1x64x32xf32> to vector<64x32xf32>
    %cst_18 = arith.constant dense<0.000000e+00> : vector<64x256xf32>
    %20 = tpu.matmul %19, %11, %cst_18 {dimension_numbers = #tpu.dot_dimension_numbers<[1], [0], [0], [1], [0, 0, 1, 1], [], []>} : vector<64x32xf32>, vector<32x256xf32>, vector<64x256xf32> -> vector<64x256xf32>
    %c1_19 = arith.constant 1 : index
    %c0_20 = arith.constant 0 : index
    %c0_21 = arith.constant 0 : index
    %21 = vector.load %arg5[%c1_19, %c0_20, %c0_21] : memref<3x64x32xf32, #tpu.memory_space<vmem>>, vector<1x64x32xf32>
    %22 = vector.shape_cast %21 : vector<1x64x32xf32> to vector<64x32xf32>
    %cst_22 = arith.constant dense<0.000000e+00> : vector<64x256xf32>
    %23 = tpu.matmul %22, %14, %cst_22 {dimension_numbers = #tpu.dot_dimension_numbers<[1], [0], [0], [1], [0, 0, 1, 1], [], []>} : vector<64x32xf32>, vector<32x256xf32>, vector<64x256xf32> -> vector<64x256xf32>
    %24 = arith.addf %20, %23 : vector<64x256xf32>
    %c2_23 = arith.constant 2 : index
    %c0_24 = arith.constant 0 : index
    %c0_25 = arith.constant 0 : index
    %25 = vector.load %arg5[%c2_23, %c0_24, %c0_25] : memref<3x64x32xf32, #tpu.memory_space<vmem>>, vector<1x64x32xf32>
    %26 = vector.shape_cast %25 : vector<1x64x32xf32> to vector<64x32xf32>
    %cst_26 = arith.constant dense<0.000000e+00> : vector<64x256xf32>
    %27 = tpu.matmul %26, %17, %cst_26 {dimension_numbers = #tpu.dot_dimension_numbers<[1], [0], [0], [1], [0, 0, 1, 1], [], []>} : vector<64x32xf32>, vector<32x256xf32>, vector<64x256xf32> -> vector<64x256xf32>
    %28 = arith.addf %24, %27 : vector<64x256xf32>
    %c0_27 = arith.constant 0 : index
    %c0_28 = arith.constant 0 : index
    %29 = vector.load %arg6[%c0_27, %c0_28] : memref<1x256xf32, #tpu.memory_space<vmem>>, vector<1x256xf32>
    %30 = vector.broadcast %29 : vector<1x256xf32> to vector<64x256xf32>
    %31 = arith.mulf %28, %30 : vector<64x256xf32>
    %c0_29 = arith.constant 0 : index
    %c0_30 = arith.constant 0 : index
    %32 = vector.load %arg7[%c0_29, %c0_30] : memref<1x256xf32, #tpu.memory_space<vmem>>, vector<1x256xf32>
    %33 = vector.broadcast %32 : vector<1x256xf32> to vector<64x256xf32>
    %34 = arith.addf %31, %33 : vector<64x256xf32>
    %cst_31 = arith.constant 0.000000e+00 : f32
    %35 = vector.broadcast %cst_31 : f32 to vector<64x256xf32>
    %36 = arith.maximumf %34, %35 : vector<64x256xf32>
    %37 = tpu.iota {dimensions = array<i32: 0>} : vector<64x256xi32>
    %c1_32 = arith.constant 1 : index
    %c0_33 = arith.constant 0 : index
    %c0_34 = arith.constant 0 : index
    %38 = vector.load %arg8[%c1_32, %c0_33, %c0_34] : memref<3x256x256xf32, #tpu.memory_space<vmem>>, vector<1x256x256xf32>
    %39 = vector.shape_cast %38 : vector<1x256x256xf32> to vector<256x256xf32>
    %cst_35 = arith.constant dense<0.000000e+00> : vector<64x256xf32>
    %40 = tpu.matmul %36, %39, %cst_35 {dimension_numbers = #tpu.dot_dimension_numbers<[1], [0], [0], [1], [0, 0, 1, 1], [], []>} : vector<64x256xf32>, vector<256x256xf32>, vector<64x256xf32> -> vector<64x256xf32>
    %cst_36 = arith.constant 0.000000e+00 : f32
    %41 = vector.broadcast %cst_36 : f32 to vector<1x256xf32>
    %c0_37 = arith.constant 0 : index
    %c0_38 = arith.constant 0 : index
    %42 = vector.load %arg11[%c0_37, %c0_38] : memref<65x256xf32, #tpu.memory_space<vmem>>, vector<1x256xf32>
    tpu.vector_store %arg11[%c0_37, %c0_38], %41 {strides = array<i32>} : memref<65x256xf32, #tpu.memory_space<vmem>>, vector<1x256xf32>,
    %c0_39 = arith.constant 0 : index
    %c0_40 = arith.constant 0 : index
    %c0_41 = arith.constant 0 : index
    %43 = vector.load %arg8[%c0_39, %c0_40, %c0_41] : memref<3x256x256xf32, #tpu.memory_space<vmem>>, vector<1x256x256xf32>
    %44 = vector.shape_cast %43 : vector<1x256x256xf32> to vector<256x256xf32>
    %cst_42 = arith.constant dense<0.000000e+00> : vector<64x256xf32>
    %45 = tpu.matmul %36, %44, %cst_42 {dimension_numbers = #tpu.dot_dimension_numbers<[1], [0], [0], [1], [0, 0, 1, 1], [], []>} : vector<64x256xf32>, vector<256x256xf32>, vector<64x256xf32> -> vector<64x256xf32>
    %c1_43 = arith.constant 1 : index
    %c0_44 = arith.constant 0 : index
    %46 = vector.load %arg11[%c1_43, %c0_44] : memref<65x256xf32, #tpu.memory_space<vmem>>, vector<64x256xf32>
    tpu.vector_store %arg11[%c1_43, %c0_44], %45 {strides = array<i32>} : memref<65x256xf32, #tpu.memory_space<vmem>>, vector<64x256xf32>,
    %c32_i32 = arith.constant 32 : i32
    %c0_i32 = arith.constant 0 : i32
    %47 = arith.cmpi eq, %c32_i32, %c0_i32 : i32
    %c1_i32 = arith.constant 1 : i32
    %48 = arith.select %47, %c1_i32, %c32_i32 : i32
    %49 = vector.broadcast %48 : i32 to vector<64x256xi32>
    %50 = arith.remsi %37, %49 : vector<64x256xi32>
    %c0_i32_45 = arith.constant 0 : i32
    %51 = vector.broadcast %c0_i32_45 : i32 to vector<64x256xi32>
    %52 = arith.cmpi ne, %50, %51 : vector<64x256xi32>
    %c0_i32_46 = arith.constant 0 : i32
    %53 = vector.broadcast %c0_i32_46 : i32 to vector<64x256xi32>
    %54 = arith.cmpi slt, %50, %53 : vector<64x256xi32>
    %c0_i32_47 = arith.constant 0 : i32
    %55 = arith.cmpi slt, %48, %c0_i32_47 : i32
    %56 = vector.broadcast %55 : i1 to vector<64x256xi1>
    %57 = vector.broadcast %56 : vector<64x256xi1> to vector<64x256xi1>
    %58 = arith.xori %54, %57 : vector<64x256xi1>
    %59 = arith.andi %58, %52 : vector<64x256xi1>
    %60 = vector.broadcast %48 : i32 to vector<64x256xi32>
    %61 = arith.addi %50, %60 : vector<64x256xi32>
    %62 = arith.select %59, %61, %50 : vector<64x256xi1>, vector<64x256xi32>
    %c0_i32_48 = arith.constant 0 : i32
    %63 = vector.broadcast %c0_i32_48 : i32 to vector<64x256xi32>
    %64 = arith.cmpi eq, %62, %63 : vector<64x256xi32>
    %c0_49 = arith.constant 0 : index
    %c0_50 = arith.constant 0 : index
    %65 = vector.load %arg11[%c0_49, %c0_50] : memref<65x256xf32, #tpu.memory_space<vmem>>, vector<64x256xf32>
    %cst_51 = arith.constant 0.000000e+00 : f32
    %66 = vector.broadcast %cst_51 : f32 to vector<64x256xf32>
    %67 = arith.select %64, %66, %65 : vector<64x256xi1>, vector<64x256xf32>
    %68 = arith.addf %40, %67 : vector<64x256xf32>
    %c2_52 = arith.constant 2 : index
    %c0_53 = arith.constant 0 : index
    %c0_54 = arith.constant 0 : index
    %69 = vector.load %arg8[%c2_52, %c0_53, %c0_54] : memref<3x256x256xf32, #tpu.memory_space<vmem>>, vector<1x256x256xf32>
    %70 = vector.shape_cast %69 : vector<1x256x256xf32> to vector<256x256xf32>
    %cst_55 = arith.constant dense<0.000000e+00> : vector<64x256xf32>
    %71 = tpu.matmul %36, %70, %cst_55 {dimension_numbers = #tpu.dot_dimension_numbers<[1], [0], [0], [1], [0, 0, 1, 1], [], []>} : vector<64x256xf32>, vector<256x256xf32>, vector<64x256xf32> -> vector<64x256xf32>
    %c0_56 = arith.constant 0 : index
    %c0_57 = arith.constant 0 : index
    %72 = vector.load %arg11[%c0_56, %c0_57] : memref<65x256xf32, #tpu.memory_space<vmem>>, vector<64x256xf32>
    tpu.vector_store %arg11[%c0_56, %c0_57], %71 {strides = array<i32>} : memref<65x256xf32, #tpu.memory_space<vmem>>, vector<64x256xf32>,
    %cst_58 = arith.constant 0.000000e+00 : f32
    %73 = vector.broadcast %cst_58 : f32 to vector<1x256xf32>
    %c64 = arith.constant 64 : index
    %c0_59 = arith.constant 0 : index
    %74 = vector.load %arg11[%c64, %c0_59] : memref<65x256xf32, #tpu.memory_space<vmem>>, vector<1x256xf32>
    tpu.vector_store %arg11[%c64, %c0_59], %73 {strides = array<i32>} : memref<65x256xf32, #tpu.memory_space<vmem>>, vector<1x256xf32>,
    %c32_i32_60 = arith.constant 32 : i32
    %c0_i32_61 = arith.constant 0 : i32
    %75 = arith.cmpi eq, %c32_i32_60, %c0_i32_61 : i32
    %c1_i32_62 = arith.constant 1 : i32
    %76 = arith.select %75, %c1_i32_62, %c32_i32_60 : i32
    %77 = vector.broadcast %76 : i32 to vector<64x256xi32>
    %78 = arith.remsi %37, %77 : vector<64x256xi32>
    %c0_i32_63 = arith.constant 0 : i32
    %79 = vector.broadcast %c0_i32_63 : i32 to vector<64x256xi32>
    %80 = arith.cmpi ne, %78, %79 : vector<64x256xi32>
    %c0_i32_64 = arith.constant 0 : i32
    %81 = vector.broadcast %c0_i32_64 : i32 to vector<64x256xi32>
    %82 = arith.cmpi slt, %78, %81 : vector<64x256xi32>
    %c0_i32_65 = arith.constant 0 : i32
    %83 = arith.cmpi slt, %76, %c0_i32_65 : i32
    %84 = vector.broadcast %83 : i1 to vector<64x256xi1>
    %85 = vector.broadcast %84 : vector<64x256xi1> to vector<64x256xi1>
    %86 = arith.xori %82, %85 : vector<64x256xi1>
    %87 = arith.andi %86, %80 : vector<64x256xi1>
    %88 = vector.broadcast %76 : i32 to vector<64x256xi32>
    %89 = arith.addi %78, %88 : vector<64x256xi32>
    %90 = arith.select %87, %89, %78 : vector<64x256xi1>, vector<64x256xi32>
    %c31_i32 = arith.constant 31 : i32
    %91 = vector.broadcast %c31_i32 : i32 to vector<64x256xi32>
    %92 = arith.cmpi eq, %90, %91 : vector<64x256xi32>
    %c1_66 = arith.constant 1 : index
    %c0_67 = arith.constant 0 : index
    %93 = vector.load %arg11[%c1_66, %c0_67] : memref<65x256xf32, #tpu.memory_space<vmem>>, vector<64x256xf32>
    %cst_68 = arith.constant 0.000000e+00 : f32
    %94 = vector.broadcast %cst_68 : f32 to vector<64x256xf32>
    %95 = arith.select %92, %94, %93 : vector<64x256xi1>, vector<64x256xf32>
    %96 = arith.addf %68, %95 : vector<64x256xf32>
    %c0_69 = arith.constant 0 : index
    %c0_70 = arith.constant 0 : index
    %97 = vector.load %arg9[%c0_69, %c0_70] : memref<64x256xf32, #tpu.memory_space<vmem>>, vector<64x256xf32>
    %cst_71 = arith.constant dense<0.000000e+00> : vector<32x256xf32>
    %98 = tpu.matmul %0, %97, %cst_71 {dimension_numbers = #tpu.dot_dimension_numbers<[1], [0], [0], [1], [0, 0, 1, 1], [], []>} : vector<32x64xf32>, vector<64x256xf32>, vector<32x256xf32> -> vector<32x256xf32>
    %c1_72 = arith.constant 1 : index
    %c0_73 = arith.constant 0 : index
    %c0_74 = arith.constant 0 : index
    %99 = vector.load %arg5[%c1_72, %c0_73, %c0_74] : memref<3x64x32xf32, #tpu.memory_space<vmem>>, vector<1x64x32xf32>
    %100 = vector.shape_cast %99 : vector<1x64x32xf32> to vector<64x32xf32>
    %cst_75 = arith.constant dense<0.000000e+00> : vector<64x256xf32>
    %101 = tpu.matmul %100, %98, %cst_75 {dimension_numbers = #tpu.dot_dimension_numbers<[1], [0], [0], [1], [0, 0, 1, 1], [], []>} : vector<64x32xf32>, vector<32x256xf32>, vector<64x256xf32> -> vector<64x256xf32>
    %102 = arith.addf %96, %101 : vector<64x256xf32>
    %c0_76 = arith.constant 0 : index
    %c0_77 = arith.constant 0 : index
    %103 = vector.load %arg10[%c0_76, %c0_77] : memref<64x256xf32, #tpu.memory_space<vmem>>, vector<64x256xf32>
    tpu.vector_store %arg10[%c0_76, %c0_77], %102 {strides = array<i32>} : memref<64x256xf32, #tpu.memory_space<vmem>>, vector<64x256xf32>,
    return
  }
  func.func @transform_0(%arg0: i32) -> (i32, i32) {
    %c0_i32 = arith.constant 0 : i32
    %c0_i32_0 = arith.constant 0 : i32
    return %arg0, %c0_i32 : i32, i32
  }
  func.func @transform_1(%arg0: i32) -> (i32, i32) {
    %c0_i32 = arith.constant 0 : i32
    %c0_i32_0 = arith.constant 0 : i32
    %c0_i32_1 = arith.constant 0 : i32
    return %c0_i32, %c0_i32_0 : i32, i32
  }
  func.func @transform_2(%arg0: i32) -> (i32, i32) {
    %c0_i32 = arith.constant 0 : i32
    %c0_i32_0 = arith.constant 0 : i32
    %c0_i32_1 = arith.constant 0 : i32
    return %c0_i32, %c0_i32_0 : i32, i32
  }
  func.func @transform_3(%arg0: i32) -> (i32, i32, i32) {
    %c0_i32 = arith.constant 0 : i32
    %c0_i32_0 = arith.constant 0 : i32
    %c0_i32_1 = arith.constant 0 : i32
    %c0_i32_2 = arith.constant 0 : i32
    return %c0_i32, %c0_i32_0, %c0_i32_1 : i32, i32, i32
  }
  func.func @transform_4(%arg0: i32) -> (i32, i32, i32) {
    %c0_i32 = arith.constant 0 : i32
    %c0_i32_0 = arith.constant 0 : i32
    %c0_i32_1 = arith.constant 0 : i32
    %c0_i32_2 = arith.constant 0 : i32
    return %c0_i32, %c0_i32_0, %c0_i32_1 : i32, i32, i32
  }
  func.func @transform_5(%arg0: i32) -> (i32, i32) {
    %c0_i32 = arith.constant 0 : i32
    %c0_i32_0 = arith.constant 0 : i32
    %c0_i32_1 = arith.constant 0 : i32
    return %c0_i32, %c0_i32_0 : i32, i32
  }
  func.func @transform_6(%arg0: i32) -> (i32, i32) {
    %c0_i32 = arith.constant 0 : i32
    %c0_i32_0 = arith.constant 0 : i32
    %c0_i32_1 = arith.constant 0 : i32
    return %c0_i32, %c0_i32_0 : i32, i32
  }
  func.func @transform_7(%arg0: i32) -> (i32, i32, i32) {
    %c0_i32 = arith.constant 0 : i32
    %c0_i32_0 = arith.constant 0 : i32
    %c0_i32_1 = arith.constant 0 : i32
    %c0_i32_2 = arith.constant 0 : i32
    return %c0_i32, %c0_i32_0, %c0_i32_1 : i32, i32, i32
  }
  func.func @transform_8(%arg0: i32) -> (i32, i32) {
    %c0_i32 = arith.constant 0 : i32
    %c0_i32_0 = arith.constant 0 : i32
    %c0_i32_1 = arith.constant 0 : i32
    return %c0_i32, %c0_i32_0 : i32, i32
  }
  func.func @transform_9(%arg0: i32) -> (i32, i32) {
    %c0_i32 = arith.constant 0 : i32
    %c0_i32_0 = arith.constant 0 : i32
    return %arg0, %c0_i32 : i32, i32
  }
}

</mosaic_0001>

<bundles_post_ra>
// kernel: tpu_custom_call.1
= control target key start
LH: loop header
LB: loop body
LE: loop exit
PB: predicated region body
PF: predicated region fallthrough
CT: control target
= control target key end

     0   :  { %14 = vsyncpa [#allocation4], 0  ;;  %s3359_s0 = inlined_call_operand.vmem [shape: f32[32,64], index: 0, kind: input, shape index: {}]   ;;  %s3360_s1 = inlined_call_operand.vmem [shape: f32[1,64], index: 1, kind: input, shape index: {}]   ;;  %s3361_s2 = inlined_call_operand.vmem [shape: f32[1,64], index: 2, kind: input, shape index: {}]   ;;  %s3362_s3 = inlined_call_operand.hbm [shape: f32[3,64,256], index: 3, kind: input, shape index: {}]   ;;  %s3363_s4 = inlined_call_operand.vmem [shape: f32[3,64,32], index: 4, kind: input, shape index: {}]   ;;  %s3364_s5 = inlined_call_operand.vmem [shape: f32[1,256], index: 5, kind: input, shape index: {}]   ;;  %s3365_s6 = inlined_call_operand.vmem [shape: f32[1,256], index: 6, kind: input, shape index: {}]   ;;  %s3366_s7 = inlined_call_operand.hbm [shape: f32[3,256,256], index: 7, kind: input, shape index: {}]   ;;  %s3367_s8 = inlined_call_operand.vmem [shape: f32[64,256], index: 8, kind: input, shape index: {}]   ;;  %s3368_s9 = inlined_call_operand.hbm [shape: f32[64,256], index: 9, kind: output, shape index: {}]  }
   0x1   :  { %15 = vsyncpa [#allocation7], 0 }
   0x2   :  { %16 = vsyncpa [#allocation5], 0  ;;  %s2700_s30 = smov [#allocation3]   ;;  %s2628_s13 = scalar_lea.hbm %s3362_s3, 6144 }
   0x3   :  { %s28_s10 = sshll.u32 %s2700_s30, 4  ;;  %p2629_p0 = scmp.ne.s32.totalorder %s3362_s3, %s2628_s13  ;;  %s29_s10 = int_to_ptr.vmem [resolvable:$true] %s28_s10 }
   0x4   :  { %p2632_p1 = scmp.lt.u32.totalorder %s2628_s13, %s3362_s3 }
   0x6   :  { %p2634_p2 = pnand %p2632_p1, %p2629_p0 }
   0x8   :  { %2637 = shalt.err (!%p2634_p2)
}
   0x9   :  { %s2638_s18 = scalar_lea.vmem %s29_s10, 6144  ;;  %p2643_p4 = scmp.lt.s32.totalorder %s29_s10, %s29_s10 }
   0xa   :  { %p2639_p3 = scmp.ne.s32.totalorder %s29_s10, %s2638_s18  ;;  %p2644_p5 = scmp.lt.s32.totalorder %s2638_s18, %s2638_s18 }
   0xc   :  { %p2645_p6 = por %p2644_p5, %p2643_p4 }
   0xe   :  { %p2646_p7 = pnand %p2645_p6, %p2639_p3 }
  0x10   :  { %2649 = shalt.err (!%p2646_p7)
}
  0x11   :  { %s2701_s19 = smov 256   ;;  %s2702_s20 = smov 16  }
  0x12   :  { %34 = dma.hbm_to_vmem [thread:$0]  %s3362_s3, 6144, %s29_s10, [#allocation4], %s2701_s19, %s2701_s19, %s2702_s20  }
  0x13   :  { %s2703_s23 = smov [#allocation6]   ;;  %s2650_s27 = scalar_lea.hbm %s3366_s7, 24576 }
  0x14   :  { %s46_s24 = sshll.u32 %s2703_s23, 4  ;;  %p2651_p8 = scmp.ne.s32.totalorder %s3366_s7, %s2650_s27  ;;  %s47_s24 = int_to_ptr.vmem [resolvable:$true] %s46_s24 }
  0x15   :  { %p2654_p9 = scmp.lt.u32.totalorder %s2650_s27, %s3366_s7 }
  0x17   :  { %p2656_p10 = pnand %p2654_p9, %p2651_p8 }
  0x19   :  { %2659 = shalt.err (!%p2656_p10)
}
  0x1a   :  { %s2660_s12 = scalar_lea.vmem %s47_s24, 24576  ;;  %p2665_p12 = scmp.lt.s32.totalorder %s47_s24, %s47_s24 }
  0x1b   :  { %p2661_p11 = scmp.ne.s32.totalorder %s47_s24, %s2660_s12  ;;  %p2666_p13 = scmp.lt.s32.totalorder %s2660_s12, %s2660_s12 }
  0x1d   :  { %p2667_p0 = por %p2666_p13, %p2665_p12 }
  0x1f   :  { %p2668_p1 = pnand %p2667_p0, %p2661_p11 }
  0x21   :  { %2671 = shalt.err (!%p2668_p1)
}
  0x22   :  { %52 = dma.hbm_to_vmem [thread:$0]  %s3366_s7, 24576, %s47_s24, [#allocation7], %s2701_s19, %s2701_s19, %s2702_s20  }
  0x23   :  { %2694 = dma.done.wait [#allocation4], 6144  }
  0x24   :  { %2695 = vsyncadd [#allocation4], 4294961152 }
  0x25   :  { %2696 = dma.done.wait [#allocation7], 24576  }
  0x26   :  { %2697 = vsyncadd [#allocation7], 4294942720  ;;  %v2704_v0 = vmov 0.0   ;;  %v211_v1 = vld [vmem:[#allocation3 + $0x88] sm:$0xff]  ;;  %v213_v2 = vld [vmem:[#allocation3 + $0x98] sm:$0xff]  ;;  %vm107_vm0 = vcmask 523264  }
  0x27   :  { %290 = vmatprep.mubr.f32.mxu1 %v2704_v0  ;;  %184 = vmatprep.mubr.f32.mxu0 %v2704_v0  ;;  %v210_v3 = vld [vmem:[#allocation3 + $0x80] sm:$0xff]  ;;  %v2262_v4 = vpack.c.bf16 %v213_v2, %v211_v1  ;;  %v212_v5 = vld [vmem:[#allocation3 + $0x90] sm:$0xff]  ;;  %v215_v6 = vld [vmem:[#allocation3 + $0xa8] sm:$0xff]  ;;  %vm438_vm1 = vcmask 261120   ;;  %vm1220_vm3 = vcmask 1040384   ;;  %vm1777_vm4 = vcmask 1046528  }
  0x28   :  { %v217_v7 = vld [vmem:[#allocation3 + $0xb8] sm:$0xff]  ;;  %v2264_v8 = vpack.c.bf16 %v212_v5, %v210_v3  ;;  %v214_v10 = vld [vmem:[#allocation3 + $0xa0] sm:$0xff]  ;;  %v216_v11 = vld [vmem:[#allocation3 + $0xb0] sm:$0xff] }
  0x29   :  { %v2266_v9 = vpack.c.bf16 %v217_v7, %v215_v6  ;;  %v219_v12 = vld [vmem:[#allocation3 + $0xc8] sm:$0xff]  ;;  %2263 = vmatprep.subr.bf16.mxu1 %v2262_v4  ;;  %v221_v13 = vld [vmem:[#allocation3 + $0xd8] sm:$0xff]  ;;  %v2268_v14 = vpack.c.bf16 %v216_v11, %v214_v10  ;;  %v218_v15 = vld [vmem:[#allocation3 + $0xc0] sm:$0xff] }
  0x2a   :  { %2265 = vmatpush1.bf16.msra.mxu1 %v2264_v8  ;;  %v2270_v16 = vpack.c.bf16 %v221_v13, %v219_v12  ;;  %v220_v17 = vld [vmem:[#allocation3 + $0xd0] sm:$0xff]  ;;  %v223_v20 = vld [vmem:[#allocation3 + $0xe8] sm:$0xff]  ;;  %v225_v21 = vld [vmem:[#allocation3 + $0xf8] sm:$0xff] }
  0x2b   :  { %2267 = vmatprep.subr.bf16.mxu1 %v2266_v9  ;;  %v61_v18 = vld [vmem:[%s3359_s0] sm:$0xff]  ;;  %v222_v23 = vld [vmem:[#allocation3 + $0xe0] sm:$0xff]  ;;  %v92_v26 = vld [vmem:[#allocation3 + $0x8] sm:$0xff]  ;;  %v2272_v29 = vpack.c.bf16 %v220_v17, %v218_v15  ;;  %v2274_v34 = vpack.c.bf16 %v225_v21, %v223_v20 }
  0x2c   :  { %v2172_v19 = vld [vmem:[%s3360_s1] ss:$0 sm:$0xff]  ;;  %v94_v27 = vld [vmem:[#allocation3 + $0x18] sm:$0xff]  ;;  %v91_v28 = vld [vmem:[#allocation3] sm:$0xff] }
  0x2d   :  { %v2797_v22 = vld [vmem:[%s3361_s2] ss:$0 sm:$0xff]  ;;  %v72_v25 = vmul.f32 %v2172_v19, %v61_v18  ;;  %v62_v30 = vld [vmem:[%s3359_s0 + $0x8] sm:$0xff]  ;;  %v2246_v31 = vpack.c.bf16 %v94_v27, %v92_v26  ;;  %v96_v33 = vld [vmem:[#allocation3 + $0x28] sm:$0xff] }
  0x2e   :  { %v224_v24 = vld [vmem:[#allocation3 + $0xf0] sm:$0xff]  ;;  %2269 = vmatpush1.bf16.msra.mxu1 %v2268_v14  ;;  %v98_v36 = vld [vmem:[#allocation3 + $0x38] sm:$0xff]  ;;  %v95_v37 = vld [vmem:[#allocation3 + $0x20] sm:$0xff]  ;;  %v73_v43 = vmul.f32 %v2172_v19, %v62_v30 }
  0x2f   :  { %v93_v32 = vld [vmem:[#allocation3 + $0x10] sm:$0xff]  ;;  %2271 = vmatprep.subr.bf16.mxu1 %v2270_v16  ;;  %2247 = vmatprep.subr.bf16.mxu0 %v2246_v31  ;;  %v2250_v39 = vpack.c.bf16 %v98_v36, %v96_v33  ;;  %v100_v40 = vld [vmem:[#allocation3 + $0x48] sm:$0xff]  ;;  %v102_v41 = vld [vmem:[#allocation3 + $0x58] sm:$0xff]  ;;  %v83_v42 = vadd.f32 %v2797_v22, %v72_v25  ;;  %v2276_v45 = vpack.c.bf16 %v224_v24, %v222_v23 }
  0x30   :  { %v2248_v35 = vpack.c.bf16 %v93_v32, %v91_v28  ;;  %v97_v38 = vld [vmem:[#allocation3 + $0x30] sm:$0xff]  ;;  %v63_v46 = vld [vmem:[%s3359_s0 + $0x10] sm:$0xff]  ;;  %v2254_v47 = vpack.c.bf16 %v102_v41, %v100_v40  ;;  %v104_v50 = vld [vmem:[#allocation3 + $0x68] sm:$0xff]  ;;  %v84_v53 = vadd.f32 %v2797_v22, %v73_v43 }
  0x31   :  { %v2252_v44 = vpack.c.bf16 %v97_v38, %v95_v37  ;;  %v99_v48 = vld [vmem:[#allocation3 + $0x40] sm:$0xff]  ;;  %v101_v49 = vld [vmem:[#allocation3 + $0x50] sm:$0xff]  ;;  %v106_v51 = vld [vmem:[#allocation3 + $0x78] sm:$0xff]  ;;  %v2806_v52 = vmax.f32 %v83_v42, 0.0  ;;  %v74_v54 = vmul.f32 %v2172_v19, %v63_v46 }
  0x32   :  { %2249 = vmatpush1.bf16.msra.mxu0 %v2248_v35  ;;  %2273 = vmatpush1.bf16.msra.mxu1 %v2272_v29  ;;  %v2256_v55 = vpack.c.bf16 %v101_v49, %v99_v48  ;;  %v64_v56 = vld [vmem:[%s3359_s0 + $0x18] sm:$0xff]  ;;  %v2258_v57 = vpack.c.bf16 %v106_v51, %v104_v50  ;;  %v103_v58 = vld [vmem:[#allocation3 + $0x60] sm:$0xff]  ;;  %v105_v59 = vld [vmem:[#allocation3 + $0x70] sm:$0xff]  ;;  %v88_v62 = vmax.f32 %v84_v53, 0.0 }
  0x33   :  { %2251 = vmatprep.subr.bf16.mxu0 %v2250_v39  ;;  %2275 = vmatprep.subr.bf16.mxu1 %v2274_v34  ;;  %v317_v60 = vld [vmem:[#allocation3 + $0x108] sm:$0xff]  ;;  %v319_v61 = vld [vmem:[#allocation3 + $0x118] sm:$0xff]  ;;  %v85_v63 = vadd.f32 %v2797_v22, %v74_v54  ;;  %v75_v1 = vmul.f32 %v2172_v19, %v64_v56  ;;  %v2260_v2 = vpack.c.bf16 %v105_v59, %v103_v58  ;;  %v316_v4 = vld [vmem:[#allocation3 + $0x100] sm:$0xff] }
  0x34   :  { %v2278_v3 = vpack.c.bf16 %v319_v61, %v317_v60  ;;  %v318_v5 = vld [vmem:[#allocation3 + $0x110] sm:$0xff]  ;;  %v321_v6 = vld [vmem:[#allocation3 + $0x128] sm:$0xff]  ;;  %v323_v7 = vld [vmem:[#allocation3 + $0x138] sm:$0xff] }
  0x35   :  { %v89_v8 = vmax.f32 %v85_v63, 0.0  ;;  %v86_v9 = vadd.f32 %v2797_v22, %v75_v1  ;;  %v2280_v10 = vpack.c.bf16 %v318_v5, %v316_v4  ;;  %v2282_v11 = vpack.c.bf16 %v323_v7, %v321_v6  ;;  %v320_v12 = vld [vmem:[#allocation3 + $0x120] sm:$0xff]  ;;  %v322_v13 = vld [vmem:[#allocation3 + $0x130] sm:$0xff]  ;;  %v325_v14 = vld [vmem:[#allocation3 + $0x148] sm:$0xff] }
  0x36   :  { %2253 = vmatpush1.bf16.msra.mxu0 %v2252_v44  ;;  %2277 = vmatpush1.bf16.msra.mxu1 %v2276_v45  ;;  %v327_v15 = vld [vmem:[#allocation3 + $0x158] sm:$0xff]  ;;  %v2284_v17 = vpack.c.bf16 %v322_v13, %v320_v12  ;;  %v324_v19 = vld [vmem:[#allocation3 + $0x140] sm:$0xff]  ;;  %v326_v20 = vld [vmem:[#allocation3 + $0x150] sm:$0xff] }
  0x37   :  { %2255 = vmatprep.subr.bf16.mxu0 %v2254_v47  ;;  %v90_v16 = vmax.f32 %v86_v9, 0.0  ;;  %v2286_v18 = vpack.c.bf16 %v327_v15, %v325_v14  ;;  %v329_v21 = vld [vmem:[#allocation3 + $0x168] sm:$0xff]  ;;  %v331_v22 = vld [vmem:[#allocation3 + $0x178] sm:$0xff]  ;;  %v2288_v23 = vpack.c.bf16 %v326_v20, %v324_v19  ;;  %v328_v25 = vld [vmem:[#allocation3 + $0x160] sm:$0xff] }
  0x38   :  { %v2290_v24 = vpack.c.bf16 %v331_v22, %v329_v21  ;;  %v330_v26 = vld [vmem:[#allocation3 + $0x170] sm:$0xff]  ;;  %v1028_v28 = vld [vmem:[#allocation6 + $0x8] sm:$0xff]  ;;  %v1030_v29 = vld [vmem:[#allocation6 + $0x18] sm:$0xff] }
  0x39   :  { %2178 = vmatmul.mubr.msk.f32.vlgmr.msra.gmra.mrb[0].mxu1 %vm107_vm0, %v2806_v52  ;;  %v2292_v27 = vpack.c.bf16 %v330_v26, %v328_v25  ;;  %v1027_v30 = vld [vmem:[#allocation6] sm:$0xff]  ;;  %v2318_v31 = vpack.c.bf16 %v1030_v29, %v1028_v28  ;;  %v1029_v32 = vld [vmem:[#allocation6 + $0x10] sm:$0xff]  ;;  %v1032_v34 = vld [vmem:[#allocation6 + $0x28] sm:$0xff] }
  0x3a   :  { %2257 = vmatpush1.bf16.msra.mxu0 %v2256_v55  ;;  %296 = vmatprep.mubr.f32.mxu1 %v2704_v0  ;;  %v2320_v33 = vpack.c.bf16 %v1029_v32, %v1027_v30  ;;  %v1034_v35 = vld [vmem:[#allocation6 + $0x38] sm:$0xff]  ;;  %v1031_v36 = vld [vmem:[#allocation6 + $0x20] sm:$0xff]  ;;  %v1033_v37 = vld [vmem:[#allocation6 + $0x30] sm:$0xff] }
  0x3b   :  { %2259 = vmatprep.subr.bf16.mxu0 %v2258_v57  ;;  %v2322_v38 = vpack.c.bf16 %v1034_v35, %v1032_v34  ;;  %v2324_v39 = vpack.c.bf16 %v1033_v37, %v1031_v36  ;;  %v1036_v40 = vld [vmem:[#allocation6 + $0x48] sm:$0xff]  ;;  %v1038_v41 = vld [vmem:[#allocation6 + $0x58] sm:$0xff]  ;;  %v1035_v43 = vld [vmem:[#allocation6 + $0x40] sm:$0xff] }
  0x3c   :  { %v2326_v42 = vpack.c.bf16 %v1038_v41, %v1036_v40  ;;  %v1037_v44 = vld [vmem:[#allocation6 + $0x50] sm:$0xff]  ;;  %v1040_v46 = vld [vmem:[#allocation6 + $0x68] sm:$0xff]  ;;  %v1042_v47 = vld [vmem:[#allocation6 + $0x78] sm:$0xff] }
  0x3d   :  { %2179 = vmatmul.mubr.msk.f32.gmra.mrb[2].mxu1 %vm107_vm0, %v88_v62  ;;  %v2328_v45 = vpack.c.bf16 %v1037_v44, %v1035_v43  ;;  %v2330_v48 = vpack.c.bf16 %v1042_v47, %v1040_v46  ;;  %v1039_v49 = vld [vmem:[#allocation6 + $0x60] sm:$0xff]  ;;  %v1041_v50 = vld [vmem:[#allocation6 + $0x70] sm:$0xff]  ;;  %v1044_v51 = vld [vmem:[#allocation6 + $0x88] sm:$0xff] }
  0x3e   :  { %2261 = vmatpush1.bf16.msra.mxu0 %v2260_v2  ;;  %302 = vmatprep.mubr.f32.mxu1 %v2704_v0  ;;  %v2332_v53 = vpack.c.bf16 %v1041_v50, %v1039_v49  ;;  %v1043_v55 = vld [vmem:[#allocation6 + $0x80] sm:$0xff]  ;;  %v1045_v56 = vld [vmem:[#allocation6 + $0x90] sm:$0xff]  ;;  %v1048_v57 = vld [vmem:[#allocation6 + $0xa8] sm:$0xff] }
  0x3f   :  { %2279 = vmatprep.subr.bf16.mxu0 %v2278_v3  ;;  %v1050_v58 = vld [vmem:[#allocation6 + $0xb8] sm:$0xff]  ;;  %v2336_v60 = vpack.c.bf16 %v1045_v56, %v1043_v55  ;;  %v1047_v63 = vld [vmem:[#allocation6 + $0xa0] sm:$0xff]  ;;  %v1049_v1 = vld [vmem:[#allocation6 + $0xb0] sm:$0xff] }
  0x40   :  { %v1052_v2 = vld [vmem:[#allocation6 + $0xc8] sm:$0xff]  ;;  %v1054_v3 = vld [vmem:[#allocation6 + $0xd8] sm:$0xff]  ;;  %v2340_v5 = vpack.c.bf16 %v1049_v1, %v1047_v63  ;;  %v1051_v9 = vld [vmem:[#allocation6 + $0xc0] sm:$0xff] }
  0x41   :  { %2174 = vmatmul.mubr.msk.f32.vlgmr.msra.gmra.mrb[0].mxu0 %vm107_vm0, %v2806_v52  ;;  %2180 = vmatmul.mubr.msk.f32.gmra.mrb[4].mxu1 %vm107_vm0, %v89_v8  ;;  %v1056_v12 = vld [vmem:[#allocation6 + $0xe8] sm:$0xff]  ;;  %v1058_v13 = vld [vmem:[#allocation6 + $0xf8] sm:$0xff]  ;;  %v1055_v20 = vld [vmem:[#allocation6 + $0xe0] sm:$0xff] }
  0x42   :  { %190 = vmatprep.mubr.f32.mxu0 %v2704_v0  ;;  %308 = vmatprep.mubr.f32.mxu1 %v2704_v0  ;;  %v2346_v19 = vpack.c.bf16 %v1058_v13, %v1056_v12  ;;  %v1057_v21 = vld [vmem:[#allocation6 + $0xf0] sm:$0xff]  ;;  %v1060_v22 = vld [vmem:[#allocation6 + $0x108] sm:$0xff]  ;;  %v1070_v47 = vld [vmem:[#allocation6 + $0x158] sm:$0xff] }
  0x43   :  { %2281 = vmatpush1.bf16.msra.mxu0 %v2280_v10  ;;  %v1053_v10 = vld [vmem:[#allocation6 + $0xd0] sm:$0xff]  ;;  %v2348_v28 = vpack.c.bf16 %v1057_v21, %v1055_v20  ;;  %v1064_v37 = vld [vmem:[#allocation6 + $0x128] sm:$0xff]  ;;  %v1071_v63 = vld [vmem:[#allocation6 + $0x160] sm:$0xff] }
  0x44   :  { %2283 = vmatprep.subr.bf16.mxu0 %v2282_v11  ;;  %v1061_v34 = vld [vmem:[#allocation6 + $0x110] sm:$0xff]  ;;  %v1068_v46 = vld [vmem:[#allocation6 + $0x148] sm:$0xff]  ;;  %v1079_v20 = vld [vmem:[#allocation6 + $0x1a0] sm:$0xff] }
  0x45   :  { %2175 = vmatmul.mubr.msk.f32.gmra.mrb[2].mxu0 %vm107_vm0, %v88_v62  ;;  %2181 = vmatmul.mubr.msk.f32.gmra.mrb[6].mxu1 %vm107_vm0, %v90_v16  ;;  %v2186_v41 = vld [vmem:[%s3363_s4 + $0x40] sm:$0xff]  ;;  %v2358_v55 = vpack.c.bf16 %v1070_v47, %v1068_v46  ;;  %v1072_v56 = vld [vmem:[#allocation6 + $0x168] sm:$0xff] }
  0x46   :  { %196 = vmatprep.mubr.f32.mxu0 %v2704_v0  ;;  %527 = vmatprep.mubr.f32.mxu1 %v2704_v0  ;;  %v1065_v43 = vld [vmem:[#allocation6 + $0x130] sm:$0xff]  ;;  %v1080_v13 = vld [vmem:[#allocation6 + $0x1a8] sm:$0xff] }
  0x47   :  { %2285 = vmatpush1.bf16.msra.mxu0 %v2284_v17  ;;  %v2344_v17 = vpack.c.bf16 %v1053_v10, %v1051_v9  ;;  %v1073_v1 = vld [vmem:[#allocation6 + $0x170] sm:$0xff] }
  0x48   :  { %2287 = vmatprep.subr.bf16.mxu0 %v2286_v18  ;;  %v1077_v12 = vld [vmem:[#allocation6 + $0x190] sm:$0xff] }
  0x49   :  { %2176 = vmatmul.mubr.msk.f32.gmra.mrb[4].mxu0 %vm107_vm0, %v89_v8  ;;  %v1081_v21 = vld [vmem:[#allocation6 + $0x1b0] sm:$0xff] }
  0x4a   :  { %202 = vmatprep.mubr.f32.mxu0 %v2704_v0 }
  0x4b   :  { %2289 = vmatpush1.bf16.msra.mxu0 %v2288_v23  ;;  %v1062_v23 = vld [vmem:[#allocation6 + $0x118] sm:$0xff] }
  0x4c   :  { %2291 = vmatprep.subr.bf16.mxu0 %v2290_v24  ;;  %v2350_v32 = vpack.c.bf16 %v1062_v23, %v1060_v22  ;;  %v2191_v23 = vld [vmem:[%s3363_s4 + $0x68] sm:$0xff] }
  0x4d   :  { %2177 = vmatmul.mubr.msk.f32.gmra.mrb[6].mxu0 %vm107_vm0, %v90_v16 }
  0x4e   :  { %396 = vmatprep.mubr.f32.mxu0 %v2704_v0 }
  0x4f   :  { %2293 = vmatpush1.bf16.msra.mxu0 %v2292_v27 }
  0x50   :  { %2319 = vmatprep.subr.bf16.mxu0 %v2318_v31 }
  0x52   :  { %2182 = vmatmul.mubr.msk.f32.vlgmr.msra.gmra.mrb[8].mxu0 %vm107_vm0, %v2806_v52  ;;  %v1046_v52 = vld [vmem:[#allocation6 + $0x98] sm:$0xff] }
  0x53   :  { %402 = vmatprep.mubr.f32.mxu0 %v2704_v0  ;;  %2321 = vmatpush1.bf16.msra.mxu0 %v2320_v33  ;;  %v2334_v54 = vpack.c.bf16 %v1046_v52, %v1044_v51  ;;  %v1059_v33 = vld [vmem:[#allocation6 + $0x100] sm:$0xff]  ;;  %v2187_v51 = vld [vmem:[%s3363_s4 + $0x48] sm:$0xff] }
  0x54   :  { %2323 = vmatprep.subr.bf16.mxu0 %v2322_v38  ;;  %v1066_v38 = vld [vmem:[#allocation6 + $0x138] sm:$0xff]  ;;  %v2352_v40 = vpack.c.bf16 %v1061_v34, %v1059_v33 }
  0x55   :  { %v2354_v44 = vpack.c.bf16 %v1066_v38, %v1064_v37  ;;  %v422_v33 = vld [vmem:[%s3363_s4 + $0x8] sm:$0xff]  ;;  %v425_v37 = vld [vmem:[%s3363_s4 + $0x20] sm:$0xff] }
  0x56   :  { %2183 = vmatmul.mubr.msk.f32.gmra.mrb[10].mxu0 %vm107_vm0, %v88_v62  ;;  %v2338_v62 = vpack.c.bf16 %v1050_v58, %v1048_v57  ;;  %v1074_v57 = vld [vmem:[#allocation6 + $0x178] sm:$0xff] }
  0x57   :  { %408 = vmatprep.mubr.f32.mxu0 %v2704_v0  ;;  %2325 = vmatpush1.bf16.msra.mxu0 %v2324_v39  ;;  %v426_v38 = vld [vmem:[%s3363_s4 + $0x28] sm:$0xff] }
  0x58   :  { %2327 = vmatprep.subr.bf16.mxu0 %v2326_v42  ;;  %v1063_v42 = vld [vmem:[#allocation6 + $0x120] sm:$0xff] }
  0x59   :  { %v2356_v50 = vpack.c.bf16 %v1065_v43, %v1063_v42  ;;  %v1539_v42 = vld [vmem:[#allocation6 + $0x410] sm:$0xff]  ;;  %v1542_v43 = vld [vmem:[#allocation6 + $0x428] sm:$0xff] }
  0x5a   :  { %2184 = vmatmul.mubr.msk.f32.gmra.mrb[12].mxu0 %vm107_vm0, %v89_v8  ;;  %v2342_v8 = vpack.c.bf16 %v1054_v3, %v1052_v2  ;;  %v1076_v2 = vld [vmem:[#allocation6 + $0x188] sm:$0xff]  ;;  %v1078_v3 = vld [vmem:[#allocation6 + $0x198] sm:$0xff] }
  0x5b   :  { %414 = vmatprep.mubr.f32.mxu0 %v2704_v0  ;;  %2329 = vmatpush1.bf16.msra.mxu0 %v2328_v45  ;;  %v2366_v10 = vpack.c.bf16 %v1078_v3, %v1076_v2  ;;  %v1556_v2 = vld [vmem:[#allocation6 + $0x498] sm:$0xff]  ;;  %v2213_v3 = vld [vmem:[%s3363_s4 + $0x98] sm:$0xff] }
  0x5c   :  { %2331 = vmatprep.subr.bf16.mxu0 %v2330_v48 }
  0x5e   :  { %2185 = vmatmul.mubr.msk.f32.gmra.mrb[14].mxu0 %vm107_vm0, %v90_v16 }
  0x5f   :  { %2333 = vmatpush1.bf16.msra.mxu0 %v2332_v53  ;;  %v1067_v53 = vld [vmem:[#allocation6 + $0x140] sm:$0xff] }
  0x60   :  { %2335 = vmatprep.subr.bf16.mxu0 %v2334_v54  ;;  %v1069_v54 = vld [vmem:[#allocation6 + $0x150] sm:$0xff] }
  0x63   :  { %2337 = vmatpush1.bf16.msra.mxu0 %v2336_v60  ;;  %v2188_v60 = vld [vmem:[%s3363_s4 + $0x50] sm:$0xff] }
  0x64   :  { %2339 = vmatprep.subr.bf16.mxu0 %v2338_v62  ;;  %v2362_v62 = vpack.c.bf16 %v1074_v57, %v1072_v56  ;;  %v1547_v56 = vld [vmem:[#allocation6 + $0x450] sm:$0xff]  ;;  %v1550_v57 = vld [vmem:[#allocation6 + $0x468] sm:$0xff] }
  0x67   :  { %2341 = vmatpush1.bf16.msra.mxu0 %v2340_v5  ;;  %v2189_v5 = vld [vmem:[%s3363_s4 + $0x58] sm:$0xff] }
  0x68   :  { %2343 = vmatprep.subr.bf16.mxu0 %v2342_v8  ;;  %v2364_v8 = vpack.c.bf16 %v1073_v1, %v1071_v63  ;;  %v1551_v63 = vld [vmem:[#allocation6 + $0x470] sm:$0xff]  ;;  %v1554_v1 = vld [vmem:[#allocation6 + $0x488] sm:$0xff] }
  0x6b   :  { %2345 = vmatpush1.bf16.msra.mxu0 %v2344_v17 }
  0x6c   :  { %2347 = vmatprep.subr.bf16.mxu0 %v2346_v19 }
  0x6f   :  { %2349 = vmatpush1.bf16.msra.mxu0 %v2348_v28  ;;  %v2192_v28 = vld [vmem:[%s3363_s4 + $0x70] sm:$0xff] }
  0x70   :  { %2351 = vmatprep.subr.bf16.mxu0 %v2350_v32  ;;  %v1540_v32 = vld [vmem:[#allocation6 + $0x418] sm:$0xff] }
  0x73   :  { %2353 = vmatpush1.bf16.msra.mxu0 %v2352_v40  ;;  %v428_v40 = vld [vmem:[%s3363_s4 + $0x38] sm:$0xff] }
  0x74   :  { %2355 = vmatprep.subr.bf16.mxu0 %v2354_v44  ;;  %v1544_v44 = vld [vmem:[#allocation6 + $0x438] sm:$0xff] }
  0x75   :  { %v2450_v47 = vpack.c.bf16 %v1544_v44, %v1542_v43  ;;  %v1580_v43 = vld [vmem:[#allocation6 + $0x558] sm:$0xff] }
  0x77   :  { %2357 = vmatpush1.bf16.msra.mxu0 %v2356_v50  ;;  %v1546_v50 = vld [vmem:[#allocation6 + $0x448] sm:$0xff] }
  0x78   :  { %2359 = vmatprep.subr.bf16.mxu0 %v2358_v55  ;;  %v1545_v55 = vld [vmem:[#allocation6 + $0x440] sm:$0xff] }
 0x10c   :  { %v292_v59 = vpop.f32.mrb[0].mxu1 }
 0x10d   :  { %v294_v61 = vpop.f32.mrb[1].mxu1 }
 0x110   :  { %v298_v4 = vpop.f32.mrb[2].mxu1 }
 0x111   :  { %v2296_v6 = vpack.c.bf16 %v298_v4, %v292_v59  ;;  %v300_v7 = vpop.f32.mrb[3].mxu1  ;;  %v2360_v59 = vpack.c.bf16 %v1069_v54, %v1067_v53 }
 0x112   :  { %v2294_v11 = vpack.c.bf16 %v300_v7, %v294_v61 }
 0x113   :  { %2361 = vmatpush1.bf16.msra.mxu0 %v2360_v59  ;;  %v2212_v59 = vld [vmem:[%s3363_s4 + $0x90] sm:$0xff] }
 0x114   :  { %v186_v14 = vpop.f32.mrb[0].mxu0  ;;  %v304_v15 = vpop.f32.mrb[4].mxu1  ;;  %2295 = vmatprep.subr.bf16.mxu1 %v2294_v11  ;;  %2363 = vmatprep.subr.bf16.mxu0 %v2362_v62  ;;  %v1075_v11 = vld [vmem:[#allocation6 + $0x180] sm:$0xff] }
 0x115   :  { %v188_v16 = vpop.f32.mrb[1].mxu0  ;;  %v306_v18 = vpop.f32.mrb[5].mxu1  ;;  %2297 = vmatpush1.bf16.msra.mxu1 %v2296_v6  ;;  %v1549_v62 = vld [vmem:[#allocation6 + $0x460] sm:$0xff] }
 0x117   :  { %2365 = vmatpush1.bf16.msra.mxu0 %v2364_v8  ;;  %v1558_v8 = vld [vmem:[#allocation6 + $0x4a8] sm:$0xff] }
 0x118   :  { %v192_v24 = vpop.f32.mrb[2].mxu0  ;;  %v310_v25 = vpop.f32.mrb[6].mxu1  ;;  %2367 = vmatprep.subr.bf16.mxu0 %v2366_v10  ;;  %v2214_v10 = vld [vmem:[%s3363_s4 + $0xa0] sm:$0xff] }
 0x119   :  { %v2304_v26 = vpack.c.bf16 %v192_v24, %v186_v14  ;;  %v194_v27 = vpop.f32.mrb[3].mxu0  ;;  %v2300_v29 = vpack.c.bf16 %v310_v25, %v304_v15  ;;  %v312_v30 = vpop.f32.mrb[7].mxu1  ;;  %v1082_v14 = vld [vmem:[#allocation6 + $0x1b8] sm:$0xff] }
 0x11a   :  { %v2302_v31 = vpack.c.bf16 %v194_v27, %v188_v16  ;;  %v2298_v35 = vpack.c.bf16 %v312_v30, %v306_v18  ;;  %v2190_v16 = vld [vmem:[%s3363_s4 + $0x60] sm:$0xff]  ;;  %v2368_v18 = vpack.c.bf16 %v1077_v12, %v1075_v11  ;;  %v2370_v19 = vpack.c.bf16 %v1082_v14, %v1080_v13  ;;  %v1557_v13 = vld [vmem:[#allocation6 + $0x4a0] sm:$0xff] }
 0x11b   :  { %v421_v30 = vld [vmem:[%s3363_s4] sm:$0xff] }
 0x11c   :  { %v198_v36 = vpop.f32.mrb[4].mxu0  ;;  %2299 = vmatprep.subr.bf16.mxu1 %v2298_v35  ;;  %2369 = vmatpush1.bf16.msra.mxu0 %v2368_v18  ;;  %v423_v35 = vld [vmem:[%s3363_s4 + $0x10] sm:$0xff]  ;;  %v1559_v14 = vld [vmem:[#allocation6 + $0x4b0] sm:$0xff] }
 0x11d   :  { %v200_v39 = vpop.f32.mrb[5].mxu0  ;;  %2301 = vmatpush1.bf16.msra.mxu1 %v2300_v29  ;;  %2371 = vmatprep.subr.bf16.mxu0 %v2370_v19  ;;  %v2193_v29 = vld [vmem:[%s3363_s4 + $0x78] sm:$0xff]  ;;  %v2468_v18 = vpack.c.bf16 %v1559_v14, %v1557_v13  ;;  %v1595_v14 = vld [vmem:[#allocation6 + $0x5d0] sm:$0xff] }
 0x11e   :  { %2303 = vmatprep.subr.bf16.mxu1 %v2302_v31  ;;  %v1538_v31 = vld [vmem:[#allocation6 + $0x408] sm:$0xff] }
 0x11f   :  { %v2446_v34 = vpack.c.bf16 %v1540_v32, %v1538_v31  ;;  %v2217_v31 = vld [vmem:[%s3363_s4 + $0xb8] sm:$0xff] }
 0x120   :  { %v204_v45 = vpop.f32.mrb[6].mxu0  ;;  %2194 = vmatmul.mubr.msk.f32.vlgmr.msra.gmra.mrb[8].mxu1 %vm438_vm1, %v2186_v41  ;;  %v1537_v41 = vld [vmem:[#allocation6 + $0x400] sm:$0xff] }
 0x121   :  { %v2308_v48 = vpack.c.bf16 %v204_v45, %v198_v36  ;;  %v206_v49 = vpop.f32.mrb[7].mxu0  ;;  %533 = vmatprep.mubr.f32.mxu1 %v2704_v0  ;;  %2305 = vmatpush1.bf16.msra.mxu1 %v2304_v26  ;;  %v2372_v26 = vpack.c.bf16 %v1081_v21, %v1079_v20  ;;  %v424_v36 = vld [vmem:[%s3363_s4 + $0x18] sm:$0xff]  ;;  %v2210_v45 = vld [vmem:[%s3363_s4 + $0x80] sm:$0xff]  ;;  %v2448_v46 = vpack.c.bf16 %v1539_v42, %v1537_v41  ;;  %v1561_v20 = vld [vmem:[#allocation6 + $0x4c0] sm:$0xff] }
 0x122   :  { %v2306_v52 = vpack.c.bf16 %v206_v49, %v200_v39  ;;  %v427_v39 = vld [vmem:[%s3363_s4 + $0x30] sm:$0xff]  ;;  %v1543_v49 = vld [vmem:[#allocation6 + $0x430] sm:$0xff]  ;;  %v1578_v42 = vld [vmem:[#allocation6 + $0x548] sm:$0xff] }
 0x123   :  { %2373 = vmatpush1.bf16.msra.mxu0 %v2372_v26  ;;  %v1563_v21 = vld [vmem:[#allocation6 + $0x4d0] sm:$0xff] }
 0x124   :  { %2307 = vmatprep.subr.bf16.mxu1 %v2306_v52  ;;  %2195 = vmatmul.mubr.msk.f32.gmra.mrb[10].mxu1 %vm438_vm1, %v2187_v51  ;;  %v1548_v51 = vld [vmem:[#allocation6 + $0x458] sm:$0xff]  ;;  %v1575_v41 = vld [vmem:[#allocation6 + $0x530] sm:$0xff] }
 0x125   :  { %v2849_v58 = vpop.f32.mrb[8].mxu0  ;;  %539 = vmatprep.mubr.f32.mxu1 %v2704_v0  ;;  %2309 = vmatpush1.bf16.msra.mxu1 %v2308_v48  ;;  %v1541_v48 = vld [vmem:[#allocation6 + $0x420] sm:$0xff]  ;;  %v2211_v52 = vld [vmem:[%s3363_s4 + $0x88] sm:$0xff]  ;;  %v2454_v54 = vpack.c.bf16 %v1548_v51, %v1546_v50 }
 0x126   :  { %v400_v61 = vpop.f32.mrb[9].mxu0  ;;  %v2452_v53 = vpack.c.bf16 %v1543_v49, %v1541_v48  ;;  %v1582_v48 = vld [vmem:[#allocation6 + $0x568] sm:$0xff]  ;;  %v1584_v49 = vld [vmem:[#allocation6 + $0x578] sm:$0xff] }
 0x127   :  { %v2490_v51 = vpack.c.bf16 %v1584_v49, %v1582_v48 }
 0x128   :  { %2196 = vmatmul.mubr.msk.f32.gmra.mrb[12].mxu1 %vm438_vm1, %v2188_v60  ;;  %v2456_v60 = vpack.c.bf16 %v1547_v56, %v1545_v55  ;;  %v1588_v55 = vld [vmem:[#allocation6 + $0x598] sm:$0xff] }
 0x129   :  { %v404_v4 = vpop.f32.mrb[10].mxu0  ;;  %545 = vmatprep.mubr.f32.mxu1 %v2704_v0 }
 0x12a   :  { %v2312_v6 = vpack.c.bf16 %v404_v4, %v2849_v58  ;;  %v406_v7 = vpop.f32.mrb[11].mxu0  ;;  %v1552_v58 = vld [vmem:[#allocation6 + $0x478] sm:$0xff]  ;;  %v2460_v4 = vpack.c.bf16 %v1551_v63, %v1549_v62 }
 0x12b   :  { %v2310_v9 = vpack.c.bf16 %v406_v7, %v400_v61  ;;  %v2458_v61 = vpack.c.bf16 %v1552_v58, %v1550_v57  ;;  %v1555_v7 = vld [vmem:[#allocation6 + $0x490] sm:$0xff]  ;;  %v1585_v58 = vld [vmem:[#allocation6 + $0x580] sm:$0xff] }
 0x12c   :  { %2197 = vmatmul.mubr.msk.f32.gmra.mrb[14].mxu1 %vm438_vm1, %v2189_v5  ;;  %v2462_v5 = vpack.c.bf16 %v1556_v2, %v1554_v1  ;;  %v1589_v1 = vld [vmem:[#allocation6 + $0x5a0] sm:$0xff]  ;;  %v1591_v2 = vld [vmem:[#allocation6 + $0x5b0] sm:$0xff] }
 0x12d   :  { %2311 = vmatprep.subr.bf16.mxu1 %v2310_v9  ;;  %v410_v15 = vpop.f32.mrb[12].mxu0  ;;  %551 = vmatprep.mubr.f32.mxu1 %v2704_v0  ;;  %v1560_v9 = vld [vmem:[#allocation6 + $0x4b8] sm:$0xff] }
 0x12e   :  { %v412_v17 = vpop.f32.mrb[13].mxu0  ;;  %v2466_v12 = vpack.c.bf16 %v1560_v9, %v1558_v8  ;;  %v1085_v8 = vld [vmem:[#allocation6 + $0x1d0] sm:$0xff] }
 0x130   :  { %2198 = vmatmul.mubr.msk.f32.gmra.mrb[16].mxu1 %vm438_vm1, %v2190_v16  ;;  %v1564_v16 = vld [vmem:[#allocation6 + $0x4d8] sm:$0xff] }
 0x131   :  { %v416_v22 = vpop.f32.mrb[14].mxu0  ;;  %557 = vmatprep.mubr.f32.mxu1 %v2704_v0 }
 0x132   :  { %v2316_v24 = vpack.c.bf16 %v416_v22, %v410_v15  ;;  %v418_v25 = vpop.f32.mrb[15].mxu0  ;;  %v1562_v15 = vld [vmem:[#allocation6 + $0x4c8] sm:$0xff] }
 0x133   :  { %v2314_v27 = vpack.c.bf16 %v418_v25, %v412_v17  ;;  %v2215_v17 = vld [vmem:[%s3363_s4 + $0xa8] sm:$0xff]  ;;  %v2470_v19 = vpack.c.bf16 %v1564_v16, %v1562_v15  ;;  %v1566_v22 = vld [vmem:[#allocation6 + $0x4e8] sm:$0xff]  ;;  %v2472_v25 = vpack.c.bf16 %v1563_v21, %v1561_v20  ;;  %v1089_v20 = vld [vmem:[#allocation6 + $0x1f0] sm:$0xff] }
 0x134   :  { %2199 = vmatmul.mubr.msk.f32.gmra.mrb[18].mxu1 %vm438_vm1, %v2191_v23  ;;  %v1568_v23 = vld [vmem:[#allocation6 + $0x4f8] sm:$0xff]  ;;  %v1088_v16 = vld [vmem:[#allocation6 + $0x1e8] sm:$0xff] }
 0x135   :  { %563 = vmatprep.mubr.f32.mxu1 %v2704_v0  ;;  %v2474_v26 = vpack.c.bf16 %v1568_v23, %v1566_v22  ;;  %v1598_v21 = vld [vmem:[#allocation6 + $0x5e8] sm:$0xff]  ;;  %v1600_v23 = vld [vmem:[#allocation6 + $0x5f8] sm:$0xff] }
 0x138   :  { %2200 = vmatmul.mubr.msk.f32.gmra.mrb[20].mxu1 %vm438_vm1, %v2192_v28  ;;  %v1567_v28 = vld [vmem:[#allocation6 + $0x4f0] sm:$0xff] }
 0x139   :  { %569 = vmatprep.mubr.f32.mxu1 %v2704_v0 }
 0x13c   :  { %2201 = vmatmul.mubr.msk.f32.gmra.mrb[22].mxu1 %vm438_vm1, %v2193_v29  ;;  %v1570_v29 = vld [vmem:[#allocation6 + $0x508] sm:$0xff] }
 0x13d   :  { %664 = vmatprep.mubr.f32.mxu1 %v2704_v0 }
 0x140   :  { %2202 = vmatmul.mubr.msk.f32.vlgmr.msra.gmra.mrb[8].mxu1 %vm438_vm1, %v421_v30  ;;  %v1572_v30 = vld [vmem:[#allocation6 + $0x518] sm:$0xff] }
 0x141   :  { %670 = vmatprep.mubr.f32.mxu1 %v2704_v0  ;;  %2313 = vmatpush1.bf16.msra.mxu1 %v2312_v6  ;;  %v1553_v6 = vld [vmem:[#allocation6 + $0x480] sm:$0xff] }
 0x142   :  { %2315 = vmatprep.subr.bf16.mxu1 %v2314_v27  ;;  %v2464_v11 = vpack.c.bf16 %v1555_v7, %v1553_v6  ;;  %v1565_v27 = vld [vmem:[#allocation6 + $0x4e0] sm:$0xff] }
 0x143   :  { %v2476_v32 = vpack.c.bf16 %v1567_v28, %v1565_v27  ;;  %v1083_v7 = vld [vmem:[#allocation6 + $0x1c0] sm:$0xff]  ;;  %v958_v28 = vld [vmem:[#allocation6 + $0x208] sm:$0xff] }
 0x144   :  { %2203 = vmatmul.mubr.msk.f32.gmra.mrb[10].mxu1 %vm438_vm1, %v422_v33  ;;  %v2478_v33 = vpack.c.bf16 %v1572_v30, %v1570_v29  ;;  %v2376_v9 = vpack.c.bf16 %v1085_v8, %v1083_v7  ;;  %v960_v29 = vld [vmem:[#allocation6 + $0x218] sm:$0xff] }
 0x145   :  { %676 = vmatprep.mubr.f32.mxu1 %v2704_v0  ;;  %2317 = vmatpush1.bf16.msra.mxu1 %v2316_v24  ;;  %v2216_v24 = vld [vmem:[%s3363_s4 + $0xb0] sm:$0xff]  ;;  %v2382_v30 = vpack.c.bf16 %v960_v29, %v958_v28  ;;  %v974_v29 = vld [vmem:[#allocation6 + $0x288] sm:$0xff] }
 0x146   :  { %2447 = vmatprep.subr.bf16.mxu1 %v2446_v34  ;;  %v1569_v34 = vld [vmem:[#allocation6 + $0x500] sm:$0xff] }
 0x148   :  { %2204 = vmatmul.mubr.msk.f32.gmra.mrb[12].mxu1 %vm438_vm1, %v423_v35  ;;  %v1571_v35 = vld [vmem:[#allocation6 + $0x510] sm:$0xff] }
 0x149   :  { %682 = vmatprep.mubr.f32.mxu1 %v2704_v0 }
 0x14c   :  { %2205 = vmatmul.mubr.msk.f32.gmra.mrb[14].mxu1 %vm438_vm1, %v424_v36  ;;  %v1574_v36 = vld [vmem:[#allocation6 + $0x528] sm:$0xff] }
 0x14d   :  { %688 = vmatprep.mubr.f32.mxu1 %v2704_v0 }
 0x150   :  { %2206 = vmatmul.mubr.msk.f32.gmra.mrb[16].mxu1 %vm438_vm1, %v425_v37  ;;  %v1576_v37 = vld [vmem:[#allocation6 + $0x538] sm:$0xff] }
 0x151   :  { %694 = vmatprep.mubr.f32.mxu1 %v2704_v0 }
 0x154   :  { %2207 = vmatmul.mubr.msk.f32.gmra.mrb[18].mxu1 %vm438_vm1, %v426_v38  ;;  %v2480_v38 = vpack.c.bf16 %v1571_v35, %v1569_v34  ;;  %v875_v34 = vld [vmem:[%s3364_s5] sm:$0x3] }
 0x155   :  { %700 = vmatprep.mubr.f32.mxu1 %v2704_v0 }
 0x158   :  { %2208 = vmatmul.mubr.msk.f32.gmra.mrb[20].mxu1 %vm438_vm1, %v427_v39  ;;  %v2482_v39 = vpack.c.bf16 %v1576_v37, %v1574_v36  ;;  %v903_v36 = vld [vmem:[%s3365_s6] sm:$0x3] }
 0x159   :  { %706 = vmatprep.mubr.f32.mxu1 %v2704_v0 }
 0x15c   :  { %2209 = vmatmul.mubr.msk.f32.gmra.mrb[22].mxu1 %vm438_vm1, %v428_v40  ;;  %v1573_v40 = vld [vmem:[#allocation6 + $0x520] sm:$0xff] }
 0x15d   :  { %810 = vmatprep.mubr.f32.mxu1 %v2704_v0  ;;  %v2484_v44 = vpack.c.bf16 %v1575_v41, %v1573_v40 }
 0x160   :  { %2218 = vmatmul.mubr.msk.f32.vlgmr.msra.gmra.mrb[8].mxu1 %vm438_vm1, %v2210_v45  ;;  %v2486_v45 = vpack.c.bf16 %v1580_v43, %v1578_v42 }
 0x161   :  { %816 = vmatprep.mubr.f32.mxu1 %v2704_v0  ;;  %2449 = vmatpush1.bf16.msra.mxu1 %v2448_v46  ;;  %v1577_v46 = vld [vmem:[#allocation6 + $0x540] sm:$0xff] }
 0x162   :  { %2451 = vmatprep.subr.bf16.mxu1 %v2450_v47  ;;  %v1579_v47 = vld [vmem:[#allocation6 + $0x550] sm:$0xff] }
 0x163   :  { %v2488_v50 = vpack.c.bf16 %v1579_v47, %v1577_v46  ;;  %v957_v46 = vld [vmem:[#allocation6 + $0x200] sm:$0xff]  ;;  %v959_v47 = vld [vmem:[#allocation6 + $0x210] sm:$0xff] }
 0x164   :  { %2219 = vmatmul.mubr.msk.f32.gmra.mrb[10].mxu1 %vm438_vm1, %v2211_v52  ;;  %v1581_v52 = vld [vmem:[#allocation6 + $0x560] sm:$0xff] }
 0x165   :  { %822 = vmatprep.mubr.f32.mxu1 %v2704_v0  ;;  %2453 = vmatpush1.bf16.msra.mxu1 %v2452_v53  ;;  %v1583_v53 = vld [vmem:[#allocation6 + $0x570] sm:$0xff] }
 0x166   :  { %2455 = vmatprep.subr.bf16.mxu1 %v2454_v54  ;;  %v1586_v54 = vld [vmem:[#allocation6 + $0x588] sm:$0xff]  ;;  %v2492_v56 = vpack.c.bf16 %v1583_v53, %v1581_v52 }
 0x167   :  { %v2494_v57 = vpack.c.bf16 %v1588_v55, %v1586_v54 }
 0x168   :  { %2220 = vmatmul.mubr.msk.f32.gmra.mrb[12].mxu1 %vm438_vm1, %v2212_v59  ;;  %v1587_v59 = vld [vmem:[#allocation6 + $0x590] sm:$0xff] }
 0x169   :  { %828 = vmatprep.mubr.f32.mxu1 %v2704_v0  ;;  %2457 = vmatpush1.bf16.msra.mxu1 %v2456_v60  ;;  %v1590_v60 = vld [vmem:[#allocation6 + $0x5a8] sm:$0xff]  ;;  %v2496_v62 = vpack.c.bf16 %v1587_v59, %v1585_v58 }
 0x16a   :  { %2459 = vmatprep.subr.bf16.mxu1 %v2458_v61  ;;  %v1592_v61 = vld [vmem:[#allocation6 + $0x5b8] sm:$0xff] }
 0x16b   :  { %v2498_v63 = vpack.c.bf16 %v1592_v61, %v1590_v60  ;;  %v961_v60 = vld [vmem:[#allocation6 + $0x220] sm:$0xff]  ;;  %v963_v61 = vld [vmem:[#allocation6 + $0x230] sm:$0xff] }
 0x16c   :  { %2221 = vmatmul.mubr.msk.f32.gmra.mrb[14].mxu1 %vm438_vm1, %v2213_v3  ;;  %v2500_v3 = vpack.c.bf16 %v1591_v2, %v1589_v1  ;;  %v966_v1 = vld [vmem:[#allocation6 + $0x248] sm:$0xff]  ;;  %v968_v2 = vld [vmem:[#allocation6 + $0x258] sm:$0xff]  ;;  %v2388_v7 = vpack.c.bf16 %v963_v61, %v961_v60  ;;  %v977_v61 = vld [vmem:[#allocation6 + $0x2a0] sm:$0xff] }
 0x16d   :  { %834 = vmatprep.mubr.f32.mxu1 %v2704_v0  ;;  %2461 = vmatpush1.bf16.msra.mxu1 %v2460_v4  ;;  %v1084_v4 = vld [vmem:[#allocation6 + $0x1c8] sm:$0xff] }
 0x16e   :  { %2463 = vmatprep.subr.bf16.mxu1 %v2462_v5  ;;  %v1086_v5 = vld [vmem:[#allocation6 + $0x1d8] sm:$0xff] }
 0x16f   :  { %v2374_v6 = vpack.c.bf16 %v1086_v5, %v1084_v4 }
 0x170   :  { %2222 = vmatmul.mubr.msk.f32.gmra.mrb[16].mxu1 %vm438_vm1, %v2214_v10  ;;  %v1594_v10 = vld [vmem:[#allocation6 + $0x5c8] sm:$0xff] }
 0x171   :  { %840 = vmatprep.mubr.f32.mxu1 %v2704_v0  ;;  %2465 = vmatpush1.bf16.msra.mxu1 %v2464_v11  ;;  %v1596_v11 = vld [vmem:[#allocation6 + $0x5d8] sm:$0xff] }
 0x172   :  { %2467 = vmatprep.subr.bf16.mxu1 %v2466_v12  ;;  %v1593_v12 = vld [vmem:[#allocation6 + $0x5c0] sm:$0xff]  ;;  %2375 = vmatprep.subr.bf16.mxu0 %v2374_v6  ;;  %v2502_v13 = vpack.c.bf16 %v1596_v11, %v1594_v10  ;;  %v2390_v10 = vpack.c.bf16 %v968_v2, %v966_v1  ;;  %v982_v2 = vld [vmem:[#allocation6 + $0x2c8] sm:$0xff] }
 0x173   :  { %2377 = vmatpush1.bf16.msra.mxu0 %v2376_v9  ;;  %v2504_v15 = vpack.c.bf16 %v1595_v14, %v1593_v12  ;;  %v965_v11 = vld [vmem:[#allocation6 + $0x240] sm:$0xff]  ;;  %v967_v12 = vld [vmem:[#allocation6 + $0x250] sm:$0xff] }
 0x174   :  { %2223 = vmatmul.mubr.msk.f32.gmra.mrb[18].mxu1 %vm438_vm1, %v2215_v17  ;;  %v1090_v17 = vld [vmem:[#allocation6 + $0x1f8] sm:$0xff] }
 0x175   :  { %846 = vmatprep.mubr.f32.mxu1 %v2704_v0  ;;  %2469 = vmatpush1.bf16.msra.mxu1 %v2468_v18  ;;  %v2378_v18 = vpack.c.bf16 %v1090_v17, %v1088_v16  ;;  %v972_v16 = vld [vmem:[#allocation6 + $0x278] sm:$0xff] }
 0x176   :  { %2471 = vmatprep.subr.bf16.mxu1 %v2470_v19  ;;  %v1087_v19 = vld [vmem:[#allocation6 + $0x1e0] sm:$0xff] }
 0x177   :  { %v2380_v22 = vpack.c.bf16 %v1089_v20, %v1087_v19  ;;  %2379 = vmatprep.subr.bf16.mxu0 %v2378_v18 }
 0x178   :  { %2224 = vmatmul.mubr.msk.f32.gmra.mrb[20].mxu1 %vm438_vm1, %v2216_v24  ;;  %v1597_v24 = vld [vmem:[#allocation6 + $0x5e0] sm:$0xff] }
 0x179   :  { %852 = vmatprep.mubr.f32.mxu1 %v2704_v0  ;;  %2473 = vmatpush1.bf16.msra.mxu1 %v2472_v25  ;;  %v1599_v25 = vld [vmem:[#allocation6 + $0x5f0] sm:$0xff] }
 0x17a   :  { %2475 = vmatprep.subr.bf16.mxu1 %v2474_v26  ;;  %v2506_v26 = vpack.c.bf16 %v1600_v23, %v1598_v21  ;;  %v2508_v27 = vpack.c.bf16 %v1599_v25, %v1597_v24  ;;  %2381 = vmatpush1.bf16.msra.mxu0 %v2380_v22  ;;  %v2392_v21 = vpack.c.bf16 %v967_v12, %v965_v11  ;;  %v969_v25 = vld [vmem:[#allocation6 + $0x260] sm:$0xff] }
 0x17b   :  { %2383 = vmatprep.subr.bf16.mxu0 %v2382_v30  ;;  %v976_v30 = vld [vmem:[#allocation6 + $0x298] sm:$0xff] }
 0x17c   :  { %2225 = vmatmul.mubr.msk.f32.gmra.mrb[22].mxu1 %vm438_vm1, %v2217_v31  ;;  %v877_v31 = vlaneseq }
 0x17d   :  { %2477 = vmatpush1.bf16.msra.mxu1 %v2476_v32 }
 0x17e   :  { %2479 = vmatprep.subr.bf16.mxu1 %v2478_v33  ;;  %v2963_v32 = vshrl.u32 %v877_v31, 7  ;;  %vm3140_vm2 = vcmp.lt.s32.totalorder %v877_v31, 256  ;;  %v2625_v31 = vld [vmem:[%s3359_s0 + $0x8] sm:$0xff] }
 0x17f   :  { %1025 = vst.msk [vmem:[#allocation2] ss:$8 sm:$0x3] %vm3140_vm2, %v2704_v0 }
 0x180   :  { %v879_v33 = vsub.s32 0, %v2963_v32  ;;  %v883_v35 = vsub.s32 1, %v2963_v32 }
 0x181   :  { %2481 = vmatpush1.bf16.msra.mxu1 %v2480_v38 }
 0x182   :  { %2483 = vmatprep.subr.bf16.mxu1 %v2482_v39  ;;  %v2973_v37 = vrot.slane %v875_v34, %v879_v33  ;;  %v2975_v38 = vrot.slane %v875_v34, %v883_v35  ;;  %v2977_v39 = vrot.slane %v903_v36, %v879_v33  ;;  %v2979_v41 = vrot.slane %v903_v36, %v883_v35 }
 0x185   :  { %2485 = vmatpush1.bf16.msra.mxu1 %v2484_v44 }
 0x186   :  { %2487 = vmatprep.subr.bf16.mxu1 %v2486_v45 }
 0x189   :  { %2489 = vmatpush1.bf16.msra.mxu1 %v2488_v50  ;;  %v962_v50 = vld [vmem:[#allocation6 + $0x228] sm:$0xff] }
 0x18a   :  { %2491 = vmatprep.subr.bf16.mxu1 %v2490_v51  ;;  %v964_v51 = vld [vmem:[#allocation6 + $0x238] sm:$0xff] }
 0x18b   :  { %v2386_v59 = vpack.c.bf16 %v964_v51, %v962_v50  ;;  %v980_v50 = vld [vmem:[#allocation6 + $0x2b8] sm:$0xff] }
 0x18d   :  { %2493 = vmatpush1.bf16.msra.mxu1 %v2492_v56  ;;  %v2384_v56 = vpack.c.bf16 %v959_v47, %v957_v46  ;;  %v975_v46 = vld [vmem:[#allocation6 + $0x290] sm:$0xff] }
 0x18e   :  { %2495 = vmatprep.subr.bf16.mxu1 %v2494_v57 }
 0x191   :  { %2497 = vmatpush1.bf16.msra.mxu1 %v2496_v62 }
 0x192   :  { %2499 = vmatprep.subr.bf16.mxu1 %v2498_v63 }
 0x195   :  { %2501 = vmatpush1.bf16.msra.mxu1 %v2500_v3 }
 0x196   :  { %2503 = vmatprep.subr.bf16.mxu1 %v2502_v13 }
 0x199   :  { %2505 = vmatpush1.bf16.msra.mxu1 %v2504_v15  ;;  %v970_v15 = vld [vmem:[#allocation6 + $0x268] sm:$0xff] }
 0x19a   :  { %2507 = vmatprep.subr.bf16.mxu1 %v2506_v26  ;;  %v2394_v24 = vpack.c.bf16 %v972_v16, %v970_v15  ;;  %v971_v26 = vld [vmem:[#allocation6 + $0x270] sm:$0xff] }
 0x19b   :  { %v983_v15 = vld [vmem:[#allocation6 + $0x2d0] sm:$0xff] }
 0x19d   :  { %2509 = vmatpush1.bf16.msra.mxu1 %v2508_v27 }
 0x233   :  { %v812_v40 = vpop.f32.mrb[8].mxu1 }
 0x234   :  { %v887_v42 = vmul.f32 %v2973_v37, %v812_v40  ;;  %v814_v43 = vpop.f32.mrb[9].mxu1  ;;  %v2396_v40 = vpack.c.bf16 %v971_v26, %v969_v25 }
 0x235   :  { %v888_v44 = vmul.f32 %v2975_v38, %v814_v43 }
 0x236   :  { %v915_v45 = vadd.f32 %v2977_v39, %v887_v42 }
 0x237   :  { %v916_v48 = vadd.f32 %v2979_v41, %v888_v44  ;;  %v818_v49 = vpop.f32.mrb[10].mxu1  ;;  %v2398_v44 = vpack.c.bf16 %v976_v30, %v974_v29  ;;  %v985_v30 = vld [vmem:[#allocation6 + $0x2e0] sm:$0xff] }
 0x238   :  { %v889_v52 = vmul.f32 %v2973_v37, %v818_v49  ;;  %v820_v53 = vpop.f32.mrb[11].mxu1  ;;  %v2989_v57 = vmax.f32 %v915_v45, 0.0  ;;  %v973_v45 = vld [vmem:[#allocation6 + $0x280] sm:$0xff]  ;;  %v978_v49 = vld [vmem:[#allocation6 + $0x2a8] sm:$0xff] }
 0x239   :  { %v2986_v54 = vmax.f32 %v916_v48, 0.0  ;;  %v890_v55 = vmul.f32 %v2975_v38, %v820_v53  ;;  %v2402_v60 = vpack.c.bf16 %v980_v50, %v978_v49  ;;  %v993_v49 = vld [vmem:[#allocation6 + $0x320] sm:$0xff]  ;;  %v995_v50 = vld [vmem:[#allocation6 + $0x330] sm:$0xff] }
 0x23a   :  { %v917_v58 = vadd.f32 %v2977_v39, %v889_v52 }
 0x23b   :  { %v918_v62 = vadd.f32 %v2979_v41, %v890_v55  ;;  %v824_v63 = vpop.f32.mrb[12].mxu1  ;;  %1155 = vmatprep.mubr.f32.mxu0 %v2986_v54  ;;  %1665 = vmatprep.mubr.f32.mxu1 %v2986_v54 }
 0x23c   :  { %v891_v3 = vmul.f32 %v2973_v37, %v824_v63  ;;  %v826_v4 = vpop.f32.mrb[13].mxu1  ;;  %1156 = vmatmul.mubr.f32.vlgmr.msra.gmra.mrb[16].mxu0 %v2989_v57  ;;  %1666 = vmatmul.mubr.f32.vlgmr.msra.gmra.mrb[24].mxu1 %v2989_v57  ;;  %v3001_v8 = vmax.f32 %v917_v58, 0.0 }
 0x23d   :  { %v2998_v5 = vmax.f32 %v918_v62, 0.0  ;;  %v892_v6 = vmul.f32 %v2975_v38, %v826_v4  ;;  %2385 = vmatpush1.bf16.msra.mxu0 %v2384_v56  ;;  %v2400_v56 = vpack.c.bf16 %v975_v46, %v973_v45  ;;  %v979_v62 = vld [vmem:[#allocation6 + $0x2b0] sm:$0xff]  ;;  %v994_v45 = vld [vmem:[#allocation6 + $0x328] sm:$0xff]  ;;  %v996_v46 = vld [vmem:[#allocation6 + $0x338] sm:$0xff] }
 0x23e   :  { %v919_v9 = vadd.f32 %v2977_v39, %v891_v3  ;;  %2387 = vmatprep.subr.bf16.mxu0 %v2386_v59  ;;  %v984_v3 = vld [vmem:[#allocation6 + $0x2d8] sm:$0xff] }
 0x23f   :  { %v920_v13 = vadd.f32 %v2979_v41, %v892_v6  ;;  %v830_v14 = vpop.f32.mrb[14].mxu1  ;;  %1161 = vmatprep.mubr.f32.mxu0 %v2998_v5  ;;  %1671 = vmatprep.mubr.f32.mxu1 %v2998_v5 }
 0x240   :  { %v893_v17 = vmul.f32 %v2973_v37, %v830_v14  ;;  %v832_v18 = vpop.f32.mrb[15].mxu1  ;;  %1162 = vmatmul.mubr.f32.gmra.mrb[18].mxu0 %v3001_v8  ;;  %1672 = vmatmul.mubr.f32.gmra.mrb[26].mxu1 %v3001_v8  ;;  %v3013_v22 = vmax.f32 %v919_v9, 0.0  ;;  %v981_v14 = vld [vmem:[#allocation6 + $0x2c0] sm:$0xff] }
 0x241   :  { %v3010_v19 = vmax.f32 %v920_v13, 0.0  ;;  %v894_v20 = vmul.f32 %v2975_v38, %v832_v18  ;;  %2389 = vmatpush1.bf16.msra.mxu0 %v2388_v7  ;;  %v2406_v13 = vpack.c.bf16 %v984_v3, %v982_v2  ;;  %v986_v18 = vld [vmem:[#allocation6 + $0x2e8] sm:$0xff]  ;;  %v2408_v26 = vpack.c.bf16 %v983_v15, %v981_v14  ;;  %v1003_v2 = vld [vmem:[#allocation6 + $0x370] sm:$0xff]  ;;  %v1012_v14 = vld [vmem:[#allocation6 + $0x3b8] sm:$0xff] }
 0x242   :  { %v921_v23 = vadd.f32 %v2977_v39, %v893_v17  ;;  %2391 = vmatprep.subr.bf16.mxu0 %v2390_v10  ;;  %v2404_v10 = vpack.c.bf16 %v979_v62, %v977_v61  ;;  %v1002_v61 = vld [vmem:[#allocation6 + $0x368] sm:$0xff]  ;;  %v1004_v62 = vld [vmem:[#allocation6 + $0x378] sm:$0xff] }
 0x243   :  { %v922_v27 = vadd.f32 %v2979_v41, %v894_v20  ;;  %v836_v28 = vpop.f32.mrb[16].mxu1  ;;  %1167 = vmatprep.mubr.f32.mxu0 %v3010_v19  ;;  %1677 = vmatprep.mubr.f32.mxu1 %v3010_v19  ;;  %v988_v20 = vld [vmem:[#allocation6 + $0x2f8] sm:$0xff]  ;;  %v1006_v3 = vld [vmem:[#allocation6 + $0x388] sm:$0xff] }
 0x244   :  { %v895_v33 = vmul.f32 %v2973_v37, %v836_v28  ;;  %v838_v34 = vpop.f32.mrb[17].mxu1  ;;  %1168 = vmatmul.mubr.f32.gmra.mrb[20].mxu0 %v3013_v22  ;;  %1678 = vmatmul.mubr.f32.gmra.mrb[28].mxu1 %v3013_v22  ;;  %v3025_v42 = vmax.f32 %v921_v23, 0.0  ;;  %v2410_v29 = vpack.c.bf16 %v988_v20, %v986_v18  ;;  %v1011_v18 = vld [vmem:[#allocation6 + $0x3b0] sm:$0xff]  ;;  %v1014_v20 = vld [vmem:[#allocation6 + $0x3c8] sm:$0xff] }
 0x245   :  { %v3022_v35 = vmax.f32 %v922_v27, 0.0  ;;  %v896_v36 = vmul.f32 %v2975_v38, %v838_v34  ;;  %2393 = vmatpush1.bf16.msra.mxu0 %v2392_v21  ;;  %v990_v34 = vld [vmem:[#allocation6 + $0x308] sm:$0xff] }
 0x246   :  { %v923_v43 = vadd.f32 %v2977_v39, %v895_v33  ;;  %2395 = vmatprep.subr.bf16.mxu0 %v2394_v24  ;;  %v987_v33 = vld [vmem:[#allocation6 + $0x2f0] sm:$0xff] }
 0x247   :  { %v924_v47 = vadd.f32 %v2979_v41, %v896_v36  ;;  %v842_v48 = vpop.f32.mrb[18].mxu1  ;;  %1173 = vmatprep.mubr.f32.mxu0 %v3022_v35  ;;  %1683 = vmatprep.mubr.f32.mxu1 %v3022_v35  ;;  %v992_v36 = vld [vmem:[#allocation6 + $0x318] sm:$0xff] }
 0x248   :  { %v897_v51 = vmul.f32 %v2973_v37, %v842_v48  ;;  %v844_v52 = vpop.f32.mrb[19].mxu1  ;;  %1174 = vmatmul.mubr.f32.gmra.mrb[22].mxu0 %v3025_v42  ;;  %1684 = vmatmul.mubr.f32.gmra.mrb[30].mxu1 %v3025_v42  ;;  %v3037_v58 = vmax.f32 %v923_v43, 0.0  ;;  %v2414_v43 = vpack.c.bf16 %v992_v36, %v990_v34  ;;  %v2418_v48 = vpack.c.bf16 %v996_v46, %v994_v45  ;;  %v1017_v34 = vld [vmem:[#allocation6 + $0x3e0] sm:$0xff]  ;;  %v1019_v36 = vld [vmem:[#allocation6 + $0x3f0] sm:$0xff] }
 0x249   :  { %v3034_v53 = vmax.f32 %v924_v47, 0.0  ;;  %v898_v55 = vmul.f32 %v2975_v38, %v844_v52  ;;  %2397 = vmatpush1.bf16.msra.mxu0 %v2396_v40  ;;  %v1000_v52 = vld [vmem:[#allocation6 + $0x358] sm:$0xff]  ;;  %v1860_v45 = vld [vmem:[%s3367_s8] sm:$0xff]  ;;  %v1862_v46 = vld [vmem:[%s3367_s8 + $0x10] sm:$0xff] }
 0x24a   :  { %v925_v59 = vadd.f32 %v2977_v39, %v897_v51  ;;  %2399 = vmatprep.subr.bf16.mxu0 %v2398_v44  ;;  %v989_v44 = vld [vmem:[#allocation6 + $0x300] sm:$0xff]  ;;  %v998_v51 = vld [vmem:[#allocation6 + $0x348] sm:$0xff] }
 0x24b   :  { %v926_v63 = vadd.f32 %v2979_v41, %v898_v55  ;;  %v848_v1 = vpop.f32.mrb[20].mxu1  ;;  %1179 = vmatprep.mubr.f32.mxu0 %v3034_v53  ;;  %1689 = vmatprep.mubr.f32.mxu1 %v3034_v53  ;;  %v2420_v55 = vpack.c.bf16 %v995_v50, %v993_v49  ;;  %v2512_v49 = vpack.c.bf16 %v1862_v46, %v1860_v45 }
 0x24c   :  { %v899_v4 = vmul.f32 %v2973_v37, %v848_v1  ;;  %v850_v6 = vpop.f32.mrb[21].mxu1  ;;  %1180 = vmatmul.mubr.f32.gmra.mrb[24].mxu0 %v3037_v58  ;;  %1690 = vmatmul.mubr.f32.gmra.mrb[32].mxu1 %v3037_v58  ;;  %v3049_v11 = vmax.f32 %v925_v59, 0.0  ;;  %v997_v59 = vld [vmem:[#allocation6 + $0x340] sm:$0xff] }
 0x24d   :  { %v3046_v7 = vmax.f32 %v926_v63, 0.0  ;;  %v900_v9 = vmul.f32 %v2975_v38, %v850_v6  ;;  %2401 = vmatpush1.bf16.msra.mxu0 %v2400_v56  ;;  %v2422_v56 = vpack.c.bf16 %v1000_v52, %v998_v51  ;;  %v1001_v1 = vld [vmem:[#allocation6 + $0x360] sm:$0xff]  ;;  %v1864_v51 = vld [vmem:[%s3367_s8 + $0x20] sm:$0xff] }
 0x24e   :  { %v927_v12 = vadd.f32 %v2977_v39, %v899_v4  ;;  %2403 = vmatprep.subr.bf16.mxu0 %v2402_v60  ;;  %v999_v60 = vld [vmem:[#allocation6 + $0x350] sm:$0xff]  ;;  %v1008_v4 = vld [vmem:[#allocation6 + $0x398] sm:$0xff]  ;;  %v2428_v6 = vpack.c.bf16 %v1003_v2, %v1001_v1  ;;  %v1866_v52 = vld [vmem:[%s3367_s8 + $0x30] sm:$0xff] }
 0x24f   :  { %v928_v16 = vadd.f32 %v2979_v41, %v900_v9  ;;  %v854_v17 = vpop.f32.mrb[22].mxu1  ;;  %1185 = vmatprep.mubr.f32.mxu0 %v3046_v7  ;;  %1695 = vmatprep.mubr.f32.mxu1 %v3046_v7  ;;  %v2424_v63 = vpack.c.bf16 %v999_v60, %v997_v59  ;;  %v2430_v9 = vpack.c.bf16 %v1008_v4, %v1006_v3  ;;  %v1872_v1 = vld [vmem:[%s3367_s8 + $0x60] sm:$0xff]  ;;  %v1874_v2 = vld [vmem:[%s3367_s8 + $0x70] sm:$0xff] }
 0x250   :  { %v901_v21 = vmul.f32 %v2973_v37, %v854_v17  ;;  %v856_v23 = vpop.f32.mrb[23].mxu1  ;;  %1186 = vmatmul.mubr.f32.gmra.mrb[26].mxu0 %v3049_v11  ;;  %1696 = vmatmul.mubr.f32.gmra.mrb[34].mxu1 %v3049_v11  ;;  %v3061_v27 = vmax.f32 %v927_v12, 0.0  ;;  %v1007_v12 = vld [vmem:[#allocation6 + $0x390] sm:$0xff]  ;;  %v1009_v17 = vld [vmem:[#allocation6 + $0x3a0] sm:$0xff]  ;;  %v2516_v59 = vpack.c.bf16 %v1866_v52, %v1864_v51 }
 0x251   :  { %v3058_v24 = vmax.f32 %v928_v16, 0.0  ;;  %v902_v25 = vmul.f32 %v2975_v38, %v856_v23  ;;  %2405 = vmatpush1.bf16.msra.mxu0 %v2404_v10  ;;  %v1005_v10 = vld [vmem:[#allocation6 + $0x380] sm:$0xff]  ;;  %v2436_v23 = vpack.c.bf16 %v1011_v18, %v1009_v17 }
 0x252   :  { %v929_v28 = vadd.f32 %v2977_v39, %v901_v21  ;;  %2407 = vmatprep.subr.bf16.mxu0 %v2406_v13  ;;  %v2412_v39 = vpack.c.bf16 %v987_v33, %v985_v30  ;;  %v1010_v13 = vld [vmem:[#allocation6 + $0x3a8] sm:$0xff]  ;;  %v2432_v15 = vpack.c.bf16 %v1007_v12, %v1005_v10  ;;  %v1016_v21 = vld [vmem:[#allocation6 + $0x3d8] sm:$0xff] }
 0x253   :  { %v930_v37 = vadd.f32 %v2979_v41, %v902_v25  ;;  %1191 = vmatprep.mubr.f32.mxu0 %v3058_v24  ;;  %1701 = vmatprep.mubr.f32.mxu1 %v3058_v24  ;;  %v991_v41 = vld [vmem:[#allocation6 + $0x310] sm:$0xff]  ;;  %v2434_v16 = vpack.c.bf16 %v1012_v14, %v1010_v13  ;;  %v2438_v25 = vpack.c.bf16 %v1016_v21, %v1014_v20  ;;  %v1020_v30 = vld [vmem:[#allocation6 + $0x3f8] sm:$0xff] }
 0x254   :  { %1192 = vmatmul.mubr.f32.gmra.mrb[28].mxu0 %v3061_v27  ;;  %1702 = vmatmul.mubr.f32.gmra.mrb[36].mxu1 %v3061_v27  ;;  %v3071_v40 = vmax.f32 %v929_v28, 0.0  ;;  %v2416_v47 = vpack.c.bf16 %v991_v41, %v989_v44  ;;  %v1015_v28 = vld [vmem:[#allocation6 + $0x3d0] sm:$0xff]  ;;  %v2444_v44 = vpack.c.bf16 %v1019_v36, %v1017_v34 }
 0x255   :  { %v3069_v38 = vmax.f32 %v930_v37, 0.0  ;;  %2409 = vmatpush1.bf16.msra.mxu0 %v2408_v26  ;;  %v1013_v26 = vld [vmem:[#allocation6 + $0x3c0] sm:$0xff] }
 0x256   :  { %2411 = vmatprep.subr.bf16.mxu0 %v2410_v29  ;;  %v1018_v29 = vld [vmem:[#allocation6 + $0x3e8] sm:$0xff]  ;;  %v2440_v33 = vpack.c.bf16 %v1015_v28, %v1013_v26 }
 0x257   :  { %1197 = vmatprep.mubr.f32.mxu0 %v3069_v38  ;;  %1707 = vmatprep.mubr.f32.mxu1 %v3069_v38  ;;  %v2442_v37 = vpack.c.bf16 %v1020_v30, %v1018_v29 }
 0x258   :  { %1198 = vmatmul.mubr.f32.gmra.mrb[30].mxu0 %v3071_v40  ;;  %1708 = vmatmul.mubr.f32.gmra.mrb[38].mxu1 %v3071_v40 }
 0x259   :  { %2413 = vmatpush1.bf16.msra.mxu0 %v2412_v39  ;;  %1487 = vmatprep.mubr.f32.mxu0 %v2986_v54  ;;  %v2426_v54 = vpack.c.bf16 %v1004_v62, %v1002_v61  ;;  %v1861_v39 = vld [vmem:[%s3367_s8 + $0x8] sm:$0xff]  ;;  %v1868_v61 = vld [vmem:[%s3367_s8 + $0x40] sm:$0xff]  ;;  %v1870_v62 = vld [vmem:[%s3367_s8 + $0x50] sm:$0xff] }
 0x25a   :  { %2415 = vmatprep.subr.bf16.mxu0 %v2414_v43  ;;  %2085 = vmatprep.mubr.f32.mxu1 %v2704_v0  ;;  %v1863_v43 = vld [vmem:[%s3367_s8 + $0x18] sm:$0xff] }
 0x25b   :  { %v2510_v41 = vpack.c.bf16 %v1863_v43, %v1861_v39 }
 0x25d   :  { %2417 = vmatpush1.bf16.msra.mxu0 %v2416_v47  ;;  %v1865_v47 = vld [vmem:[%s3367_s8 + $0x28] sm:$0xff] }
 0x25e   :  { %2419 = vmatprep.subr.bf16.mxu0 %v2418_v48  ;;  %v1867_v48 = vld [vmem:[%s3367_s8 + $0x38] sm:$0xff] }
 0x25f   :  { %v2514_v50 = vpack.c.bf16 %v1867_v48, %v1865_v47  ;;  %v1291_v48 = vand.u32 31, %v2963_v32 }
 0x261   :  { %2421 = vmatpush1.bf16.msra.mxu0 %v2420_v55  ;;  %v1869_v55 = vld [vmem:[%s3367_s8 + $0x48] sm:$0xff]  ;;  %vm3204_vm5 = vcmp.eq.s32.totalorder %v1291_v48, 0 }
 0x262   :  { %2423 = vmatprep.subr.bf16.mxu0 %v2422_v56  ;;  %v1871_v56 = vld [vmem:[%s3367_s8 + $0x58] sm:$0xff] }
 0x263   :  { %v2518_v60 = vpack.c.bf16 %v1871_v56, %v1869_v55 }
 0x265   :  { %2425 = vmatpush1.bf16.msra.mxu0 %v2424_v63  ;;  %v1873_v63 = vld [vmem:[%s3367_s8 + $0x68] sm:$0xff] }
 0x266   :  { %2427 = vmatprep.subr.bf16.mxu0 %v2426_v54 }
 0x269   :  { %2429 = vmatpush1.bf16.msra.mxu0 %v2428_v6 }
 0x26a   :  { %2431 = vmatprep.subr.bf16.mxu0 %v2430_v9 }
 0x26d   :  { %2433 = vmatpush1.bf16.msra.mxu0 %v2432_v15 }
 0x26e   :  { %2435 = vmatprep.subr.bf16.mxu0 %v2434_v16 }
 0x271   :  { %2437 = vmatpush1.bf16.msra.mxu0 %v2436_v23 }
 0x272   :  { %2439 = vmatprep.subr.bf16.mxu0 %v2438_v25 }
 0x275   :  { %2441 = vmatpush1.bf16.msra.mxu0 %v2440_v33 }
 0x276   :  { %2443 = vmatprep.subr.bf16.mxu0 %v2442_v37 }
 0x279   :  { %2445 = vmatpush1.bf16.msra.mxu0 %v2444_v44 }
 0x27a   :  { %2511 = vmatprep.subr.bf16.mxu0 %v2510_v41 }
 0x27c   :  { %1488 = vmatmul.mubr.f32.vlgmr.msra.gmra.mrb[32].mxu0 %v2989_v57  ;;  %v1875_v57 = vld [vmem:[%s3367_s8 + $0x78] sm:$0xff] }
 0x27d   :  { %1493 = vmatprep.mubr.f32.mxu0 %v2998_v5  ;;  %2513 = vmatpush1.bf16.msra.mxu0 %v2512_v49  ;;  %v2520_v5 = vpack.c.bf16 %v1870_v62, %v1868_v61  ;;  %v2522_v54 = vpack.c.bf16 %v1875_v57, %v1873_v63 }
 0x27e   :  { %2515 = vmatprep.subr.bf16.mxu0 %v2514_v50 }
 0x280   :  { %1494 = vmatmul.mubr.f32.gmra.mrb[34].mxu0 %v3001_v8  ;;  %v2524_v8 = vpack.c.bf16 %v1874_v2, %v1872_v1 }
 0x281   :  { %1499 = vmatprep.mubr.f32.mxu0 %v3010_v19  ;;  %2517 = vmatpush1.bf16.msra.mxu0 %v2516_v59 }
 0x282   :  { %2519 = vmatprep.subr.bf16.mxu0 %v2518_v60 }
 0x284   :  { %1500 = vmatmul.mubr.f32.gmra.mrb[36].mxu0 %v3013_v22  ;;  %v2624_v22 = vld [vmem:[%s3359_s0] sm:$0xff] }
 0x285   :  { %1505 = vmatprep.mubr.f32.mxu0 %v3022_v35  ;;  %2521 = vmatpush1.bf16.msra.mxu0 %v2520_v5  ;;  %v2626_v35 = vld [vmem:[%s3359_s0 + $0x10] sm:$0xff]  ;;  %v952_v5 = vadd.s32 32, %v2963_v32 }
 0x286   :  { %2523 = vmatprep.subr.bf16.mxu0 %v2522_v54 }
 0x288   :  { %1506 = vmatmul.mubr.f32.gmra.mrb[38].mxu0 %v3025_v42  ;;  %v2627_v42 = vld [vmem:[%s3359_s0 + $0x18] sm:$0xff] }
 0x289   :  { %1511 = vmatprep.mubr.f32.mxu0 %v3034_v53  ;;  %2525 = vmatpush1.bf16.msra.mxu0 %v2524_v8 }
 0x28c   :  { %1512 = vmatmul.mubr.f32.gmra.mrb[40].mxu0 %v3037_v58 }
 0x28d   :  { %1517 = vmatprep.mubr.f32.mxu0 %v3046_v7 }
 0x290   :  { %1518 = vmatmul.mubr.f32.gmra.mrb[42].mxu0 %v3049_v11 }
 0x291   :  { %1523 = vmatprep.mubr.f32.mxu0 %v3058_v24 }
 0x294   :  { %1524 = vmatmul.mubr.f32.gmra.mrb[44].mxu0 %v3061_v27 }
 0x295   :  { %1529 = vmatprep.mubr.f32.mxu0 %v3069_v38 }
 0x298   :  { %1530 = vmatmul.mubr.f32.gmra.mrb[46].mxu0 %v3071_v40 }
 0x299   :  { %1952 = vmatprep.mubr.f32.mxu0 %v2704_v0 }
 0x29c   :  { %2226 = vmatmul.mubr.msk.f32.vlgmr.msra.gmra.mrb[48].mxu0 %vm107_vm0, %v2624_v22 }
 0x29d   :  { %1958 = vmatprep.mubr.f32.mxu0 %v2704_v0 }
 0x2a0   :  { %2227 = vmatmul.mubr.msk.f32.gmra.mrb[50].mxu0 %vm107_vm0, %v2625_v31 }
 0x2a1   :  { %1964 = vmatprep.mubr.f32.mxu0 %v2704_v0 }
 0x2a4   :  { %2228 = vmatmul.mubr.msk.f32.gmra.mrb[52].mxu0 %vm107_vm0, %v2626_v35 }
 0x2a5   :  { %1970 = vmatprep.mubr.f32.mxu0 %v2704_v0 }
 0x2a8   :  { %2229 = vmatmul.mubr.msk.f32.gmra.mrb[54].mxu0 %vm107_vm0, %v2627_v42 }
 0x2a9   :  { %2073 = vmatprep.mubr.f32.mxu0 %v2704_v0 }
 0x30f   :  { %v1157_v53 = vpop.f32.mrb[16].mxu0  ;;  %v1667_v58 = vpop.f32.mrb[24].mxu1 }
 0x310   :  { %v1221_v7 = vrot.slane %v1157_v53, 7  ;;  %v1159_v11 = vpop.f32.mrb[17].mxu0  ;;  %v1669_v24 = vpop.f32.mrb[25].mxu1 }
 0x311   :  { %v1222_v27 = vrot.slane %v1159_v11, 7 }
 0x312   :  { %1269 = vst [vmem:[#allocation2] sm:$0xfe] %v1221_v7 }
 0x313   :  { %1270 = vst [vmem:[#allocation2 + $0x8] sm:$0xfe] %v1222_v27  ;;  %v1163_v38 = vpop.f32.mrb[18].mxu0  ;;  %v3171_v40 = vpop.f32.mrb[26].mxu1 }
 0x314   :  { %v1223_v3 = vrot.slane %v1163_v38, 7  ;;  %v1165_v4 = vpop.f32.mrb[19].mxu0  ;;  %v3173_v6 = vpop.f32.mrb[27].mxu1  ;;  %v1779_v18 = vrot.slane %v3171_v40, 1 }
 0x315   :  { %v1225_v9 = vrot.slane %v1165_v4, 7  ;;  %v1782_v25 = vrot.slane %v3173_v6, 1 }
 0x316   :  { %v1224_v10 = vsel %vm1220_vm3, %v1221_v7, %v1223_v3 }
 0x317   :  { %v1226_v12 = vsel %vm1220_vm3, %v1222_v27, %v1225_v9  ;;  %v1169_v13 = vpop.f32.mrb[20].mxu0  ;;  %v1679_v14 = vpop.f32.mrb[28].mxu1 }
 0x318   :  { %v1227_v15 = vrot.slane %v1169_v13, 7  ;;  %v1171_v16 = vpop.f32.mrb[21].mxu0  ;;  %v1681_v17 = vpop.f32.mrb[29].mxu1  ;;  %v1784_v20 = vrot.slane %v1679_v14, 1 }
 0x319   :  { %v1229_v21 = vrot.slane %v1171_v16, 7  ;;  %v1391_v23 = vld [vmem:[#allocation2] sm:$0xff]  ;;  %v1786_v26 = vrot.slane %v1681_v17, 1 }
 0x31a   :  { %v3180_v28 = vsel %vm1220_vm3, %v1223_v3, %v1227_v15  ;;  %1714 = vst [vmem:[#allocation2] sm:$0xff] %v1667_v58  ;;  %v1392_v29 = vld [vmem:[#allocation2 + $0x8] sm:$0xff]  ;;  %v1785_v30 = vsel %vm1777_vm4, %v1779_v18, %v1784_v20  ;;  %v1407_v27 = vsel %vm3204_vm5, 0.0, %v1391_v23 }
 0x31b   :  { %v3184_v33 = vsel %vm1220_vm3, %v1225_v9, %v1229_v21  ;;  %v1175_v37 = vpop.f32.mrb[22].mxu0  ;;  %v1685_v34 = vpop.f32.mrb[30].mxu1  ;;  %1715 = vst [vmem:[#allocation2 + $0x8] sm:$0xff] %v1669_v24  ;;  %v3186_v36 = vadd.f32 %v1785_v30, %v1224_v10  ;;  %v1787_v39 = vsel %vm1777_vm4, %v1782_v25, %v1786_v26  ;;  %v1408_v6 = vsel %vm3204_vm5, 0.0, %v1392_v29 }
 0x31c   :  { %v1231_v43 = vrot.slane %v1175_v37, 7  ;;  %v1177_v44 = vpop.f32.mrb[23].mxu0  ;;  %v1687_v41 = vpop.f32.mrb[31].mxu1  ;;  %v1788_v45 = vrot.slane %v1685_v34, 1  ;;  %v3189_v46 = vadd.f32 %v1787_v39, %v1226_v12 }
 0x31d   :  { %v1233_v47 = vrot.slane %v1177_v44, 7  ;;  %v1790_v49 = vrot.slane %v1687_v41, 1 }
 0x31e   :  { %v3193_v50 = vsel %vm1220_vm3, %v1227_v15, %v1231_v43  ;;  %v3196_v51 = vsel %vm1777_vm4, %v1784_v20, %v1788_v45 }
 0x31f   :  { %v3199_v52 = vsel %vm1220_vm3, %v1229_v21, %v1233_v47  ;;  %v1181_v55 = vpop.f32.mrb[24].mxu0  ;;  %v1691_v56 = vpop.f32.mrb[32].mxu1  ;;  %v3202_v59 = vsel %vm1777_vm4, %v1786_v26, %v1790_v49 }
 0x320   :  { %v1235_v60 = vrot.slane %v1181_v55, 7  ;;  %v1183_v61 = vpop.f32.mrb[25].mxu0  ;;  %v1693_v62 = vpop.f32.mrb[33].mxu1  ;;  %v1792_v63 = vrot.slane %v1691_v56, 1 }
 0x321   :  { %v1237_v57 = vrot.slane %v1183_v61, 7  ;;  %v1741_v54 = vld [vmem:[#allocation2] sm:$0xfe]  ;;  %v1794_v1 = vrot.slane %v1693_v62, 1 }
 0x322   :  { %v3209_v2 = vsel %vm1220_vm3, %v1231_v43, %v1235_v60  ;;  %v1778_v8 = vrot.slane %v1741_v54, 1  ;;  %v1742_v22 = vld [vmem:[#allocation2 + $0x8] sm:$0xfe]  ;;  %v3212_v31 = vsel %vm1777_vm4, %v1788_v45, %v1792_v63 }
 0x323   :  { %v3215_v35 = vsel %vm1220_vm3, %v1233_v47, %v1237_v57  ;;  %v1187_v42 = vpop.f32.mrb[26].mxu0  ;;  %v1697_v53 = vpop.f32.mrb[34].mxu1  ;;  %v1781_v58 = vrot.slane %v1742_v22, 1  ;;  %v1795_v40 = vsel %vm1777_vm4, %v1790_v49, %v1794_v1 }
 0x324   :  { %v1239_v7 = vrot.slane %v1187_v42, 7  ;;  %v1189_v11 = vpop.f32.mrb[27].mxu0  ;;  %v1699_v24 = vpop.f32.mrb[35].mxu1  ;;  %v1780_v38 = vsel %vm1777_vm4, %v1778_v8, %v1779_v18  ;;  %v1796_v13 = vrot.slane %v1697_v53, 1  ;;  %v1319_v42 = vand.u32 31, %v952_v5 }
 0x325   :  { %v1241_v3 = vrot.slane %v1189_v11, 7  ;;  %v3221_v4 = vadd.f32 %v1780_v38, %v1407_v27  ;;  %v1783_v9 = vsel %vm1777_vm4, %v1781_v58, %v1782_v25  ;;  %v1798_v14 = vrot.slane %v1699_v24, 1 }
 0x326   :  { %v3227_v10 = vsel %vm1220_vm3, %v1235_v60, %v1239_v7  ;;  %v3229_v12 = vadd.f32 %v1783_v9, %v1408_v6  ;;  %v1797_v23 = vsel %vm1777_vm4, %v1792_v63, %v1796_v13  ;;  %vm1387_vm7 = vcmp.eq.s32.totalorder %v1319_v42, 0 }
 0x327   :  { %v3232_v15 = vsel %vm1220_vm3, %v1237_v57, %v1241_v3  ;;  %v1193_v16 = vpop.f32.mrb[28].mxu0  ;;  %v1703_v17 = vpop.f32.mrb[36].mxu1  ;;  %v1799_v26 = vsel %vm1777_vm4, %v1794_v1, %v1798_v14  ;;  %v951_v57 = vadd.s32 24, %v2963_v32 }
 0x328   :  { %v1243_v18 = vrot.slane %v1193_v16, 7  ;;  %v1195_v20 = vpop.f32.mrb[29].mxu0  ;;  %v1705_v21 = vpop.f32.mrb[37].mxu1  ;;  %v1800_v25 = vrot.slane %v1703_v17, 1  ;;  %v955_v16 = vadd.s32 56, %v2963_v32 }
 0x329   :  { %v1245_v29 = vrot.slane %v1195_v20, 7  ;;  %v1802_v30 = vrot.slane %v1705_v21, 1  ;;  %v1312_v54 = vand.u32 31, %v951_v57 }
 0x32a   :  { %v1244_v37 = vsel %vm1220_vm3, %v1239_v7, %v1243_v18  ;;  %v1801_v34 = vsel %vm1777_vm4, %v1796_v13, %v1800_v25 }
 0x32b   :  { %v1246_v39 = vsel %vm1220_vm3, %v1241_v3, %v1245_v29  ;;  %v1199_v43 = vpop.f32.mrb[30].mxu0  ;;  %v3239_v44 = vpop.f32.mrb[38].mxu1  ;;  %v1803_v41 = vsel %vm1777_vm4, %v1798_v14, %v1802_v30  ;;  %vm1736_vm6 = vcmp.eq.s32.totalorder %v1312_v54, 31 }
 0x32c   :  { %v1247_v45 = vrot.slane %v1199_v43, 7  ;;  %v1201_v47 = vpop.f32.mrb[31].mxu0  ;;  %v1711_v48 = vpop.f32.mrb[39].mxu1  ;;  %v1804_v49 = vrot.slane %v3239_v44, 1  ;;  %v1835_v3 = vsel %vm1736_vm6, 0.0, %v1795_v40 }
 0x32d   :  { %v1249_v55 = vrot.slane %v1201_v47, 7  ;;  %v1806_v56 = vrot.slane %v1711_v48, 1 }
 0x32e   :  { %v1248_v60 = vsel %vm1220_vm3, %v1243_v18, %v1247_v45  ;;  %1285 = vst [vmem:[#allocation2 + $0x80] sm:$0x1] %v1247_v45  ;;  %v1805_v61 = vsel %vm1777_vm4, %v1800_v25, %v1804_v49  ;;  %v1340_v25 = vand.u32 31, %v955_v16 }
 0x32f   :  { %v1250_v62 = vsel %vm1220_vm3, %v1245_v29, %v1249_v55  ;;  %1286 = vst [vmem:[#allocation2 + $0x88] sm:$0x1] %v1249_v55  ;;  %v1807_v63 = vsel %vm1777_vm4, %v1802_v30, %v1806_v56 }
 0x330   :  { %1731 = vst.msk [vmem:[#allocation2 + $0x80] ss:$8 sm:$0x3] %vm3140_vm2, %v2704_v0  ;;  %vm1740_vm8 = vcmp.eq.s32.totalorder %v1340_v25, 31 }
 0x357   :  { %v1501_v1 = vpop.f32.mrb[36].mxu0 }
 0x358   :  { %v1502_v8 = vadd.f32 %v1501_v1, %v3180_v28  ;;  %v1503_v22 = vpop.f32.mrb[37].mxu0  ;;  %v1834_v28 = vsel %vm1736_vm6, 0.0, %v3212_v31  ;;  %v1757_v31 = vld [vmem:[#allocation2 + $0x80] sm:$0x1] }
 0x359   :  { %v1504_v53 = vadd.f32 %v1503_v22, %v3184_v33  ;;  %v1415_v33 = vsel %vm1387_vm7, 0.0, %v3209_v2  ;;  %v1758_v2 = vld [vmem:[#allocation2 + $0x88] sm:$0x1] }
 0x35a   :  { %v3255_v58 = vadd.f32 %v3196_v51, %v1502_v8 }
 0x35b   :  { %v1507_v7 = vpop.f32.mrb[38].mxu0  ;;  %v3258_v19 = vadd.f32 %v3202_v59, %v1504_v53  ;;  %v1416_v59 = vsel %vm1387_vm7, 0.0, %v3215_v35  ;;  %v1808_v35 = vrot.slane %v1757_v31, 1  ;;  %v2230_v53 = vld [vmem:[%s3363_s4 + $0x40] sm:$0xff] }
 0x35c   :  { %v1508_v11 = vadd.f32 %v1507_v7, %v3193_v50  ;;  %v1509_v24 = vpop.f32.mrb[39].mxu0  ;;  %v2232_v7 = vld [vmem:[%s3363_s4 + $0x50] sm:$0xff] }
 0x35d   :  { %v1510_v27 = vadd.f32 %v1509_v24, %v3199_v52  ;;  %v2233_v24 = vld [vmem:[%s3363_s4 + $0x58] sm:$0xff] }
 0x35e   :  { %v3263_v38 = vadd.f32 %v1834_v28, %v1508_v11  ;;  %v2231_v11 = vld [vmem:[%s3363_s4 + $0x48] sm:$0xff] }
 0x35f   :  { %v1513_v51 = vpop.f32.mrb[40].mxu0  ;;  %v3266_v6 = vadd.f32 %v1835_v3, %v1510_v27  ;;  %v2234_v27 = vld [vmem:[%s3363_s4 + $0x60] sm:$0xff]  ;;  %v2235_v28 = vld [vmem:[%s3363_s4 + $0x68] sm:$0xff]  ;;  %v2236_v3 = vld [vmem:[%s3363_s4 + $0x70] sm:$0xff] }
 0x360   :  { %v1514_v9 = vadd.f32 %v1513_v51, %v1415_v33  ;;  %v1515_v13 = vpop.f32.mrb[41].mxu0  ;;  %v2237_v33 = vld [vmem:[%s3363_s4 + $0x78] sm:$0xff]  ;;  %s2705_s4 = smov [#allocation8]  }
 0x361   :  { %v1516_v14 = vadd.f32 %v1515_v13, %v1416_v59  ;;  %s2159_s12 = sshll.u32 %s2705_s4, 4  ;;  %s2160_s12 = int_to_ptr.vmem [resolvable:$true] %s2159_s12 }
 0x362   :  { %v3269_v50 = vadd.f32 %v1797_v23, %v1514_v9  ;;  %v1810_v23 = vrot.slane %v1758_v2, 1  ;;  %s2672_s3 = scalar_lea.vmem %s2160_s12, 2048  ;;  %p2677_p3 = scmp.lt.s32.totalorder %s2160_s12, %s2160_s12 }
 0x363   :  { %v1519_v52 = vpop.f32.mrb[42].mxu0  ;;  %v3272_v17 = vadd.f32 %v1799_v26, %v1516_v14  ;;  %p2673_p2 = scmp.ne.s32.totalorder %s2160_s12, %s2672_s3  ;;  %p2678_p4 = scmp.lt.s32.totalorder %s2672_s3, %s2672_s3 }
 0x364   :  { %v1520_v40 = vadd.f32 %v1519_v52, %v3227_v10  ;;  %v1521_v18 = vpop.f32.mrb[43].mxu0  ;;  %v1809_v10 = vsel %vm1777_vm4, %v1804_v49, %v1808_v35 }
 0x365   :  { %v1522_v20 = vadd.f32 %v1521_v18, %v3232_v15  ;;  %v1811_v15 = vsel %vm1777_vm4, %v1806_v56, %v1810_v23  ;;  %v1842_v57 = vsel %vm1740_vm8, 0.0, %v1809_v10  ;;  %p2679_p5 = por %p2678_p4, %p2677_p3 }
 0x366   :  { %v3276_v21 = vadd.f32 %v1801_v34, %v1520_v40  ;;  %v1843_v5 = vsel %vm1740_vm8, 0.0, %v1811_v15 }
 0x367   :  { %v1525_v29 = vpop.f32.mrb[44].mxu0  ;;  %v3278_v30 = vadd.f32 %v1803_v41, %v1522_v20  ;;  %p2680_p6 = pnand %p2679_p5, %p2673_p2 }
 0x368   :  { %v1526_v43 = vadd.f32 %v1525_v29, %v1244_v37  ;;  %v1527_v32 = vpop.f32.mrb[45].mxu0 }
 0x369   :  { %v1528_v44 = vadd.f32 %v1527_v32, %v1246_v39 }
 0x36a   :  { %v3280_v26 = vadd.f32 %v1805_v61, %v1526_v43 }
 0x36b   :  { %v1531_v45 = vpop.f32.mrb[46].mxu0  ;;  %v3283_v47 = vadd.f32 %v1807_v63, %v1528_v44 }
 0x36c   :  { %v1532_v34 = vadd.f32 %v1531_v45, %v1248_v60  ;;  %v1533_v48 = vpop.f32.mrb[47].mxu0 }
 0x36d   :  { %v1534_v55 = vadd.f32 %v1533_v48, %v1250_v62 }
 0x36e   :  { %v3286_v41 = vadd.f32 %v1842_v57, %v1532_v34 }
 0x36f   :  { %v1954_v37 = vpop.f32.mrb[48].mxu0  ;;  %v3288_v54 = vadd.f32 %v1843_v5, %v1534_v55 }
 0x370   :  { %v1956_v39 = vpop.f32.mrb[49].mxu0 }
 0x373   :  { %v1960_v61 = vpop.f32.mrb[50].mxu0 }
 0x374   :  { %v2528_v1 = vpack.c.bf16 %v1960_v61, %v1954_v37  ;;  %v1962_v8 = vpop.f32.mrb[51].mxu0 }
 0x375   :  { %v2526_v49 = vpack.c.bf16 %v1962_v8, %v1956_v39 }
 0x377   :  { %2527 = vmatprep.subr.bf16.mxu0 %v2526_v49  ;;  %2534 = vmatprep.subr.bf16.mxu1 %v2526_v49  ;;  %v1966_v63 = vpop.f32.mrb[52].mxu0 }
 0x378   :  { %2529 = vmatpush1.bf16.msra.mxu0 %v2528_v1  ;;  %2536 = vmatpush1.bf16.msra.mxu1 %v2528_v1  ;;  %v1968_v56 = vpop.f32.mrb[53].mxu0 }
 0x37b   :  { %v1972_v60 = vpop.f32.mrb[54].mxu0 }
 0x37c   :  { %v2532_v62 = vpack.c.bf16 %v1972_v60, %v1966_v63  ;;  %v1974_v22 = vpop.f32.mrb[55].mxu0 }
 0x37d   :  { %v2530_v42 = vpack.c.bf16 %v1974_v22, %v1968_v56 }
 0x37f   :  { %2531 = vmatprep.subr.bf16.mxu0 %v2530_v42  ;;  %2535 = vmatprep.subr.bf16.mxu1 %v2530_v42 }
 0x380   :  { %2533 = vmatpush1.bf16.msra.mxu0 %v2532_v62  ;;  %2537 = vmatpush1.bf16.msra.mxu1 %v2532_v62 }
 0x383   :  { %2238 = vmatmul.mubr.msk.f32.vlgmr.msra.gmra.mrb[32].mxu0 %vm438_vm1, %v2230_v53  ;;  %2240 = vmatmul.mubr.msk.f32.vlgmr.msra.gmra.mrb[40].mxu1 %vm438_vm1, %v2232_v7 }
 0x384   :  { %2079 = vmatprep.mubr.f32.mxu0 %v2704_v0  ;;  %2091 = vmatprep.mubr.f32.mxu1 %v2704_v0 }
 0x387   :  { %2239 = vmatmul.mubr.msk.f32.gmra.mrb[34].mxu0 %vm438_vm1, %v2231_v11  ;;  %2241 = vmatmul.mubr.msk.f32.gmra.mrb[42].mxu1 %vm438_vm1, %v2233_v24 }
 0x388   :  { %2097 = vmatprep.mubr.f32.mxu1 %v2704_v0 }
 0x38b   :  { %2242 = vmatmul.mubr.msk.f32.gmra.mrb[44].mxu1 %vm438_vm1, %v2234_v27 }
 0x38c   :  { %2103 = vmatprep.mubr.f32.mxu1 %v2704_v0 }
 0x38f   :  { %2243 = vmatmul.mubr.msk.f32.gmra.mrb[46].mxu1 %vm438_vm1, %v2235_v28 }
 0x390   :  { %2109 = vmatprep.mubr.f32.mxu1 %v2704_v0 }
 0x393   :  { %2244 = vmatmul.mubr.msk.f32.gmra.mrb[48].mxu1 %vm438_vm1, %v2236_v3 }
 0x394   :  { %2115 = vmatprep.mubr.f32.mxu1 %v2704_v0 }
 0x397   :  { %2245 = vmatmul.mubr.msk.f32.gmra.mrb[50].mxu1 %vm438_vm1, %v2237_v33 }
 0x456   :  { %v2075_v51 = vpop.f32.mrb[32].mxu0  ;;  %v2087_v9 = vpop.f32.mrb[40].mxu1 }
 0x457   :  { %v2539_v59 = vadd.f32 %v3221_v4, %v2075_v51  ;;  %v2126_v13 = vadd.f32 %v2087_v9, %v3255_v58  ;;  %v2077_v14 = vpop.f32.mrb[33].mxu0  ;;  %v2089_v16 = vpop.f32.mrb[41].mxu1 }
 0x458   :  { %v2541_v52 = vadd.f32 %v3229_v12, %v2077_v14  ;;  %v2127_v31 = vadd.f32 %v2089_v16, %v3258_v19 }
 0x459   :  { %2138 = vst [vmem:[#allocation8] sm:$0xff] %v2539_v59  ;;  %2142 = vst [vmem:[#allocation8 + $0x20] sm:$0xff] %v2126_v13 }
 0x45a   :  { %2139 = vst [vmem:[#allocation8 + $0x8] sm:$0xff] %v2541_v52  ;;  %2143 = vst [vmem:[#allocation8 + $0x28] sm:$0xff] %v2127_v31  ;;  %v2081_v0 = vpop.f32.mrb[34].mxu0  ;;  %v2093_v40 = vpop.f32.mrb[42].mxu1 }
 0x45b   :  { %v2543_v18 = vadd.f32 %v3186_v36, %v2081_v0  ;;  %v2128_v2 = vadd.f32 %v2093_v40, %v3263_v38  ;;  %v2083_v20 = vpop.f32.mrb[35].mxu0  ;;  %v2095_v4 = vpop.f32.mrb[43].mxu1 }
 0x45c   :  { %v2545_v58 = vadd.f32 %v3189_v46, %v2083_v20  ;;  %v2129_v25 = vadd.f32 %v2095_v4, %v3266_v6 }
 0x45d   :  { %2140 = vst [vmem:[#allocation8 + $0x10] sm:$0xff] %v2543_v18  ;;  %2144 = vst [vmem:[#allocation8 + $0x30] sm:$0xff] %v2128_v2 }
 0x45e   :  { %2141 = vst [vmem:[#allocation8 + $0x18] sm:$0xff] %v2545_v58  ;;  %2145 = vst [vmem:[#allocation8 + $0x38] sm:$0xff] %v2129_v25  ;;  %v2099_v12 = vpop.f32.mrb[44].mxu1 }
 0x45f   :  { %v2130_v19 = vadd.f32 %v2099_v12, %v3269_v50  ;;  %v2101_v35 = vpop.f32.mrb[45].mxu1 }
 0x460   :  { %v2131_v29 = vadd.f32 %v2101_v35, %v3272_v17 }
 0x461   :  { %2146 = vst [vmem:[#allocation8 + $0x40] sm:$0xff] %v2130_v19 }
 0x462   :  { %2147 = vst [vmem:[#allocation8 + $0x48] sm:$0xff] %v2131_v29  ;;  %v2105_v36 = vpop.f32.mrb[46].mxu1 }
 0x463   :  { %v2132_v38 = vadd.f32 %v2105_v36, %v3276_v21  ;;  %v2107_v23 = vpop.f32.mrb[47].mxu1 }
 0x464   :  { %v2133_v46 = vadd.f32 %v2107_v23, %v3278_v30 }
 0x465   :  { %2148 = vst [vmem:[#allocation8 + $0x50] sm:$0xff] %v2132_v38 }
 0x466   :  { %2149 = vst [vmem:[#allocation8 + $0x58] sm:$0xff] %v2133_v46  ;;  %v2111_v6 = vpop.f32.mrb[48].mxu1 }
 0x467   :  { %v2134_v43 = vadd.f32 %v2111_v6, %v3280_v26  ;;  %v2113_v32 = vpop.f32.mrb[49].mxu1 }
 0x468   :  { %v2135_v44 = vadd.f32 %v2113_v32, %v3283_v47 }
 0x469   :  { %2150 = vst [vmem:[#allocation8 + $0x60] sm:$0xff] %v2134_v43 }
 0x46a   :  { %2151 = vst [vmem:[#allocation8 + $0x68] sm:$0xff] %v2135_v44  ;;  %v2117_v50 = vpop.f32.mrb[50].mxu1 }
 0x46b   :  { %v2136_v17 = vadd.f32 %v2117_v50, %v3286_v41  ;;  %v2119_v10 = vpop.f32.mrb[51].mxu1 }
 0x46c   :  { %v2137_v21 = vadd.f32 %v2119_v10, %v3288_v54 }
 0x46d   :  { %2152 = vst [vmem:[#allocation8 + $0x70] sm:$0xff] %v2136_v17 }
 0x46e   :  { %2153 = vst [vmem:[#allocation8 + $0x78] sm:$0xff] %v2137_v21 }
 0x46f   :  { %2683 = shalt.err (!%p2680_p6)
}
 0x470   :  { %s2684_s7 = scalar_lea.hbm %s3368_s9, 2048 }
 0x471   :  { %p2685_p7 = scmp.ne.s32.totalorder %s3368_s9, %s2684_s7  ;;  %p2688_p8 = scmp.lt.u32.totalorder %s2684_s7, %s3368_s9 }
 0x473   :  { %p2690_p9 = pnand %p2688_p8, %p2685_p7 }
 0x475   :  { %2693 = shalt.err (!%p2690_p9)
}
 0x476   :  { %2165 = dma.vmem_to_hbm [thread:$0]  %s2160_s12, 2048, %s3368_s9, [#allocation5], %s2701_s19, %s2701_s19, %s2702_s20  }
 0x477   :  { %2698 = dma.done.wait [#allocation5], 2048  }
 0x478   :  { %2699 = vsyncadd [#allocation5], 4294965248 }
 0x479   :  { %2169 = vsyncpa [#allocation4], 1 }
 0x47a   :  { %2170 = vsyncpa [#allocation7], 1 }
 0x47b   :  { %2171 = vsyncpa [#allocation5], 1 }

</bundles_post_ra>
